<compile_context>
chip_gen: v7x
topology: tpu7x:2x2x1
jax: 0.10.0
libtpu: 0.0.40
codegen_flags: <defaults>
</compile_context>

<pallas_src>
import functools

import numpy as np
import jax
import jax.numpy as jnp
from jax import lax
from jax.experimental import pallas as pl
from jax.experimental.pallas import tpu as pltpu


# -----------------------------------------------------------------------------
# shared math helpers (pure jnp, used inside the kernel and in the reference)
# -----------------------------------------------------------------------------
_SQRT_2_OVER_PI = 0.7978845608028654


def gelu_tanh(x):
    # TODO(synk): PyTorch nn.GELU() defaults to the exact erf form; the tanh
    # approximation is used here (erf has no guaranteed Mosaic lowering).
    return 0.5 * x * (1.0 + jnp.tanh(_SQRT_2_OVER_PI * (x + 0.044715 * x * x * x)))


def softplus(x):
    # numerically stable log(1 + exp(x)) built only from exp/log/max/abs
    return jnp.maximum(x, 0.0) + jnp.log(1.0 + jnp.exp(-jnp.abs(x)))


def layer_norm(y, gamma, beta, eps=1e-5):
    mean = jnp.mean(y, axis=-1, keepdims=True)
    var = jnp.mean(jnp.square(y - mean), axis=-1, keepdims=True)
    return (y - mean) * lax.rsqrt(var + eps) * gamma + beta


# -----------------------------------------------------------------------------
# fused Block kernel
# -----------------------------------------------------------------------------
def block_kernel(n_heads, n_experts, n_common, top_k, matmul_dtype,
                 x_ref, noise_ref,
                 wqkv_ref, wproj_h_ref, bproj_ref, ln1_g_ref, ln1_b_ref,
                 wrn_ref, brn_ref,
                 w1_all_ref, b1_all_ref, w2_all_ref, b2r_ref, b2c_sum_ref,
                 ln2_g_ref, ln2_b_ref,
                 o_ref):
    f32 = jnp.float32
    BB, T, C = x_ref.shape
    H = C // n_heads
    N = BB * T
    E_tot = n_experts + n_common
    FF = w1_all_ref.shape[1] // E_tot                                  # 4*C

    # matmul operands go to the MXU in `matmul_dtype` (bf16 on v6e/v7x fast
    # path); accumulation and all elementwise math stay in f32.
    def mm(a, b):
        return jnp.dot(a.astype(matmul_dtype), b.astype(matmul_dtype),
                       preferred_element_type=f32)

    def bmm(spec, a, b):
        return jnp.einsum(spec, a.astype(matmul_dtype), b.astype(matmul_dtype),
                          preferred_element_type=f32)

    # ---------------- multi-head causal self-attention -----------------------
    # fused QKV projection for all heads: one big-M MXU matmul.
    # The attention scale is pre-folded into the Q columns of wqkv host-side.
    x2 = x_ref[...].reshape(N, C)                                      # (N, C)
    qkv = mm(x2, wqkv_ref[...])                                        # (N, 3C)

    def heads_major(base):
        # gather the per-head lane slices and fold heads into the batch dim:
        # (n_heads, N, H) -> (n_heads*BB, T, H)   (sublane-tile aligned reshape)
        stk = jnp.stack([qkv[:, base + h * H: base + (h + 1) * H]
                         for h in range(n_heads)], axis=0)
        return stk.reshape(n_heads * BB, T, H)

    q_s = heads_major(0)
    k_s = heads_major(C)
    v_s = heads_major(2 * C)

    row = lax.broadcasted_iota(jnp.int32, (T, T), 0)
    col = lax.broadcasted_iota(jnp.int32, (T, T), 1)
    causal = (col <= row)[None, :, :]                                  # (1, T, T)

    s = bmm('bqd,bkd->bqk', q_s, k_s)                                  # (nH*BB, T, T)
    s = jnp.where(causal, s, -jnp.inf)
    m = jnp.max(s, axis=-1, keepdims=True)
    e = jnp.exp(s - m)                                                 # masked -> 0
    p = e * pl.reciprocal(jnp.sum(e, axis=-1, keepdims=True), approx=True)
    att_s = bmm('bqk,bkd->bqd', p, v_s)                                # (nH*BB, T, H)

    # head-batched output projection (replaces the n_heads-way lane concat):
    # sa = sum_h att_h @ Wproj[h*H:(h+1)*H, :]
    att_h = att_s.reshape(n_heads, N, H)
    proj = bmm('hnd,hdc->hnc', att_h, wproj_h_ref[...])                # (nH, N, C)
    sa = proj[0]
    for h in range(1, n_heads):
        sa = sa + proj[h]
    sa = sa + bproj_ref[...]
    x1 = x2 + layer_norm(sa, ln1_g_ref[...], ln1_b_ref[...])           # (N, C)

    # ---------------- noisy top-k router (fused logits|noise matmul) ---------
    rn = mm(x1, wrn_ref[...]) + brn_ref[...]                           # (N, 2*NE)
    logits = rn[:, :n_experts]
    nlog = rn[:, n_experts:]
    noisy = logits + noise_ref[...].reshape(N, n_experts) * softplus(nlog)

    # iterative top-k mask (ties -> lowest index, same as torch.topk)
    eidx = lax.broadcasted_iota(jnp.int32, (N, n_experts), 1)
    work = noisy
    sel_mask = jnp.zeros((N, n_experts), dtype=jnp.bool_)
    for _ in range(top_k):
        mmax = jnp.max(work, axis=-1, keepdims=True)
        first = jnp.min(jnp.where(work == mmax, eidx, n_experts),
                        axis=-1, keepdims=True)
        sel = eidx == first
        sel_mask = jnp.logical_or(sel_mask, sel)
        work = jnp.where(sel, -jnp.inf, work)

    gmax = jnp.max(noisy, axis=-1, keepdims=True)
    ge = jnp.where(sel_mask, jnp.exp(noisy - gmax), 0.0)
    gate = ge * pl.reciprocal(jnp.sum(ge, axis=-1, keepdims=True), approx=True)

    # ---------------- experts: ONE up-proj + ONE down-proj --------------------
    # hidden columns: [expert_0 | ... | expert_{NE-1} | common_0 | ...], each
    # block is FF = 4*C = 128 lanes wide -> lane-dense (N, E_tot*FF) slab.
    hidden = gelu_tanh(mm(x1, w1_all_ref[...]) + b1_all_ref[...])      # (N, E_tot*FF)
    gate_wide = jnp.concatenate(
        [jnp.broadcast_to(gate[:, e:e + 1], (N, FF)) for e in range(n_experts)]
        + [jnp.ones((N, n_common * FF), f32)], axis=-1)                # (N, E_tot*FF)
    moe = (mm(hidden * gate_wide, w2_all_ref[...])                     # (N, C)
           + mm(gate, b2r_ref[...])                                    # gate-weighted b2e
           + b2c_sum_ref[...])                                         # sum of common b2

    # ---------------- second post-LN residual ---------------------------------
    out = x1 + layer_norm(moe, ln2_g_ref[...], ln2_b_ref[...])
    # TODO(synk): lane-dense (BB, T*C) store skipped: needs sublane->lane
    # relayout at C=32; moot at realistic C >= 128.
    o_ref[...] = out.reshape(BB, T, C).astype(o_ref.dtype)


def _cost_estimate(B, T, C, n_heads, n_experts, n_common, hid):
    N = B * T
    E_tot = n_experts + n_common
    flops = 2 * N * C * 3 * C                                      # fused qkv
    flops += 2 * 2 * B * n_heads * T * T * (C // n_heads)          # scores + p@v
    flops += 2 * N * C * C                                         # out projection
    flops += 2 * N * C * 2 * n_experts                             # router (fused)
    flops += 2 * 2 * N * C * E_tot * hid                           # experts up+down
    transc = (B * n_heads * T * T + 2 * N * n_experts + N * E_tot * hid)
    bytes_accessed = 4 * (2 * N * C + N * n_experts
                          + 3 * C * C + C * C + 2 * C * n_experts
                          + 2 * C * E_tot * hid + (n_experts + 1) * C + 8 * C)
    return pl.CostEstimate(flops=int(flops), transcendentals=int(transc),
                           bytes_accessed=int(bytes_accessed))


def block_forward(x, noise, params, *, n_heads, top_k, batch_blocks=1,
                  matmul_dtype=None, core_parallel=False):
    """x: (B, T, C); noise: (B, T, n_experts); weights stored as (in, out) = W.T.

    batch_blocks=1 is best on single-TensorCore chips (v5e/v6e).  On v7x set
    batch_blocks to a multiple of 2 and core_parallel=True so the batch axis is
    sharded across both TensorCores.  matmul_dtype=jnp.bfloat16 selects the
    native MXU path on v6e/v7x (elementwise math stays f32).
    """
    B, T, C = x.shape
    H = C // n_heads
    n_experts = params['wr'].shape[1]
    n_common = params['w1c'].shape[0]
    hid = params['w1e'].shape[2]
    assert B % batch_blocks == 0
    BB = B // batch_blocks
    md = jnp.dtype(matmul_dtype) if matmul_dtype is not None else jnp.dtype(x.dtype)

    # ---- host-side weight prep (all free / one-off) --------------------------
    scale = C ** -0.5                       # module scales by n_embd, not head_size
    wqkv = params['wqkv']
    wqkv = jnp.concatenate([wqkv[:, :C] * scale, wqkv[:, C:]], axis=1)   # fold scale into Q
    wproj_h = params['wproj'].reshape(n_heads, H, C)                     # per-head rows
    wrn = jnp.concatenate([params['wr'], params['wn']], axis=1)          # [logits | noise]
    brn = jnp.concatenate([params['br'], params['bn']], axis=1)
    w1_all = jnp.concatenate(list(params['w1e']) + list(params['w1c']), axis=1)
    b1_all = jnp.concatenate(list(params['b1e']) + list(params['b1c']), axis=1)
    w2_all = jnp.concatenate(list(params['w2e']) + list(params['w2c']), axis=0)
    b2r = params['b2e'].reshape(n_experts, C)
    b2c_sum = jnp.sum(params['b2c'], axis=0)                             # (1, C)

    # cast MXU operands once host-side (halves weight DMA traffic in bf16 mode)
    wqkv, wproj_h, wrn, w1_all, w2_all, b2r = (
        a.astype(md) for a in (wqkv, wproj_h, wrn, w1_all, w2_all, b2r))

    weights = [wqkv, wproj_h, params['bproj'], params['ln1_g'], params['ln1_b'],
               wrn, brn, w1_all, b1_all, w2_all, b2r, b2c_sum,
               params['ln2_g'], params['ln2_b']]

    kern = functools.partial(block_kernel, n_heads, n_experts, n_common, top_k, md)

    # Replicated (grid-invariant) weights; with a 1-step grid double-buffering
    # is free.  At realistic expert counts mark these pl.Buffered(1) to halve
    # their VMEM footprint (matters under v7x's 64 MiB budget).
    def replicated(a):
        nd = a.ndim
        return pl.BlockSpec(a.shape, lambda i, nd=nd: (0,) * nd)

    in_specs = ([pl.BlockSpec((BB, T, C), lambda i: (i, 0, 0)),
                 pl.BlockSpec((BB, T, n_experts), lambda i: (i, 0, 0))]
                + [replicated(w) for w in weights])

    sem = (pltpu.CORE_PARALLEL,) if core_parallel else ("parallel",)

    return pl.pallas_call(
        kern,
        out_shape=jax.ShapeDtypeStruct((B, T, C), x.dtype),
        grid_spec=pl.GridSpec(
            grid=(batch_blocks,),
            in_specs=in_specs,
            out_specs=pl.BlockSpec((BB, T, C), lambda i: (i, 0, 0)),
        ),
        compiler_params=pltpu.CompilerParams(dimension_semantics=sem),
        cost_estimate=_cost_estimate(B, T, C, n_heads, n_experts, n_common, hid),
    )(x, noise, *weights)


# -----------------------------------------------------------------------------
# plain-JAX reference (mirrors the PyTorch forward; dropout = eval identity)
# -----------------------------------------------------------------------------
def reference_block(x, noise, params, *, n_heads, top_k):
    B, T, C = x.shape
    H = C // n_heads
    E = params['wr'].shape[1]

    qkv = (x.reshape(B * T, C) @ params['wqkv']).reshape(B, T, 3 * C)
    tril = jnp.tril(jnp.ones((T, T), dtype=bool))
    heads = []
    for h in range(n_heads):
        q = qkv[:, :, h * H:(h + 1) * H]
        k = qkv[:, :, C + h * H:C + (h + 1) * H]
        v = qkv[:, :, 2 * C + h * H:2 * C + (h + 1) * H]
        wei = jnp.einsum('bqd,bkd->bqk', q, k) * (C ** -0.5)
        wei = jnp.where(tril[None], wei, -jnp.inf)
        wei = jax.nn.softmax(wei, axis=-1)
        heads.append(jnp.einsum('bqk,bkd->bqd', wei, v))
    att = jnp.concatenate(heads, axis=-1).reshape(B * T, C)
    sa = att @ params['wproj'] + params['bproj']
    x1 = x.reshape(B * T, C) + layer_norm(sa, params['ln1_g'], params['ln1_b'])

    logits = x1 @ params['wr'] + params['br']
    nlog = x1 @ params['wn'] + params['bn']
    noisy = logits + noise.reshape(B * T, E) * softplus(nlog)
    _, topi = lax.top_k(noisy, top_k)
    mask = jnp.any(jax.nn.one_hot(topi, E, dtype=bool), axis=-2)
    gate = jax.nn.softmax(jnp.where(mask, noisy, -jnp.inf), axis=-1)

    moe = jnp.zeros_like(x1)
    for e in range(params['w1e'].shape[0]):
        hdn = gelu_tanh(x1 @ params['w1e'][e] + params['b1e'][e])
        moe = moe + gate[:, e:e + 1] * (hdn @ params['w2e'][e] + params['b2e'][e])
    for e in range(params['w1c'].shape[0]):
        hdn = gelu_tanh(x1 @ params['w1c'][e] + params['b1c'][e])
        moe = moe + hdn @ params['w2c'][e] + params['b2c'][e]

    out = x1 + layer_norm(moe, params['ln2_g'], params['ln2_b'])
    return out.reshape(B, T, C), noisy


# -----------------------------------------------------------------------------
if __name__ == "__main__":
    # shapes consistent with the module: batch=2, block_size=8, n_embds=32,
    # n_heads=4 (head_size=8), 4 routed experts, 2 common experts, top_k=2
    B, T, C = 2, 8, 32
    NH = 4
    NE, NCOM, TOPK = 4, 2, 2
    HID = 4 * C

    key = jax.random.PRNGKey(0)
    keys = jax.random.split(key, 24)
    kit = iter(keys)

    def unif(k, shape, fan_in):
        b = 1.0 / np.sqrt(fan_in)
        return jax.random.uniform(k, shape, jnp.float32, -b, b)

    x = jax.random.normal(next(kit), (B, T, C), dtype=jnp.float32)

    params = dict(
        wqkv=unif(next(kit), (C, 3 * C), C),           # per-head q|k|v, fused
        wproj=unif(next(kit), (C, C), C),
        bproj=unif(next(kit), (1, C), C),
        ln1_g=1.0 + 0.05 * jax.random.normal(next(kit), (1, C), jnp.float32),
        ln1_b=0.05 * jax.random.normal(next(kit), (1, C), jnp.float32),
        wr=unif(next(kit), (C, NE), C),
        br=unif(next(kit), (1, NE), C),
        wn=unif(next(kit), (C, NE), C),
        bn=unif(next(kit), (1, NE), C),
        w1e=unif(next(kit), (NE, C, HID), C),
        b1e=unif(next(kit), (NE, 1, HID), C),
        w2e=unif(next(kit), (NE, HID, C), HID),
        b2e=unif(next(kit), (NE, 1, C), HID),
        w1c=unif(next(kit), (NCOM, C, HID), C),
        b1c=unif(next(kit), (NCOM, 1, HID), C),
        w2c=unif(next(kit), (NCOM, HID, C), HID),
        b2c=unif(next(kit), (NCOM, 1, C), HID),
        ln2_g=1.0 + 0.05 * jax.random.normal(next(kit), (1, C), jnp.float32),
        ln2_b=0.05 * jax.random.normal(next(kit), (1, C), jnp.float32),
    )

    # Deterministically pick a router-noise draw whose top-k routing margins are
    # comfortably larger than the approx-reciprocal rounding (~2^-12), so the
    # f32 kernel and the f32 reference provably select identical experts.
    k_noise = next(kit)
    best = None
    for trial in range(32):
        cand = jax.random.normal(jax.random.fold_in(k_noise, trial),
                                 (B, T, NE), dtype=jnp.float32)
        out_c, noisy = reference_block(x, cand, params, n_heads=NH, top_k=TOPK)
        svals = jnp.sort(noisy, axis=-1)
        margin = float(jnp.min(svals[:, NE - TOPK] - svals[:, NE - TOPK - 1]))
        if best is None or margin > best[0]:
            best = (margin, cand, out_c)
        if margin > 1e-2:
            break
    _, noise, ref_out = best

    # f32 path: bit-for-bit routing vs the reference, tight tolerance.
    out = block_forward(x, noise, params, n_heads=NH, top_k=TOPK, batch_blocks=1)
    out = jax.block_until_ready(out)
    np.testing.assert_allclose(np.asarray(out), np.asarray(ref_out),
                               rtol=5e-3, atol=5e-3)

    # bf16 MXU-operand path (the v6e/v7x fast path).  Routing may legitimately
    # flip for near-tied tokens vs the f32 reference, so only sanity-check it.
    out_bf16 = jax.block_until_ready(
        block_forward(x, noise, params, n_heads=NH, top_k=TOPK,
                      matmul_dtype=jnp.bfloat16))
    assert out_bf16.shape == (B, T, C)
    assert bool(jnp.all(jnp.isfinite(out_bf16)))

    print("KERNEL_OK")
</pallas_src>

<mosaic_0001>
module attributes {stable_mosaic.version = 11 : i64} {
  func.func @block_kernel(%arg0: i32, %arg1: memref<2x8x32xf32, #tpu.memory_space<vmem>>, %arg2: memref<2x8x4xf32, #tpu.memory_space<vmem>>, %arg3: memref<32x96xf32, #tpu.memory_space<vmem>>, %arg4: memref<4x8x32xf32, #tpu.memory_space<vmem>>, %arg5: memref<1x32xf32, #tpu.memory_space<vmem>>, %arg6: memref<1x32xf32, #tpu.memory_space<vmem>>, %arg7: memref<1x32xf32, #tpu.memory_space<vmem>>, %arg8: memref<32x8xf32, #tpu.memory_space<vmem>>, %arg9: memref<1x8xf32, #tpu.memory_space<vmem>>, %arg10: memref<32x768xf32, #tpu.memory_space<vmem>>, %arg11: memref<1x768xf32, #tpu.memory_space<vmem>>, %arg12: memref<768x32xf32, #tpu.memory_space<vmem>>, %arg13: memref<4x32xf32, #tpu.memory_space<vmem>>, %arg14: memref<1x32xf32, #tpu.memory_space<vmem>>, %arg15: memref<1x32xf32, #tpu.memory_space<vmem>>, %arg16: memref<1x32xf32, #tpu.memory_space<vmem>>, %arg17: memref<2x8x32xf32, #tpu.memory_space<vmem>>) attributes {dimension_semantics = [#tpu.dimension_semantics<parallel>], iteration_bounds = array<i64: 1>, scalar_prefetch = 0 : i64, scratch_operands = 0 : i64, tpu.core_type = #tpu.core_type<tc>, window_params = [{transform_indices = @transform_0, window_bounds = array<i64: 2, 8, 32>}, {transform_indices = @transform_1, window_bounds = array<i64: 2, 8, 4>}, {pipeline_mode = #tpu.pipeline_mode<synchronous>, transform_indices = @transform_2, window_bounds = array<i64: 32, 96>}, {pipeline_mode = #tpu.pipeline_mode<synchronous>, transform_indices = @transform_3, window_bounds = array<i64: 4, 8, 32>}, {pipeline_mode = #tpu.pipeline_mode<synchronous>, transform_indices = @transform_4, window_bounds = array<i64: 1, 32>}, {pipeline_mode = #tpu.pipeline_mode<synchronous>, transform_indices = @transform_5, window_bounds = array<i64: 1, 32>}, {pipeline_mode = #tpu.pipeline_mode<synchronous>, transform_indices = @transform_6, window_bounds = array<i64: 1, 32>}, {pipeline_mode = #tpu.pipeline_mode<synchronous>, transform_indices = @transform_7, window_bounds = array<i64: 32, 8>}, {pipeline_mode = #tpu.pipeline_mode<synchronous>, transform_indices = @transform_8, window_bounds = array<i64: 1, 8>}, {pipeline_mode = #tpu.pipeline_mode<synchronous>, transform_indices = @transform_9, window_bounds = array<i64: 32, 768>}, {pipeline_mode = #tpu.pipeline_mode<synchronous>, transform_indices = @transform_10, window_bounds = array<i64: 1, 768>}, {pipeline_mode = #tpu.pipeline_mode<synchronous>, transform_indices = @transform_11, window_bounds = array<i64: 768, 32>}, {pipeline_mode = #tpu.pipeline_mode<synchronous>, transform_indices = @transform_12, window_bounds = array<i64: 4, 32>}, {pipeline_mode = #tpu.pipeline_mode<synchronous>, transform_indices = @transform_13, window_bounds = array<i64: 1, 32>}, {pipeline_mode = #tpu.pipeline_mode<synchronous>, transform_indices = @transform_14, window_bounds = array<i64: 1, 32>}, {pipeline_mode = #tpu.pipeline_mode<synchronous>, transform_indices = @transform_15, window_bounds = array<i64: 1, 32>}, {transform_indices = @transform_16, window_bounds = array<i64: 2, 8, 32>}]} {
    %c0 = arith.constant 0 : index
    %c0_0 = arith.constant 0 : index
    %c0_1 = arith.constant 0 : index
    %0 = vector.load %arg1[%c0, %c0_0, %c0_1] : memref<2x8x32xf32, #tpu.memory_space<vmem>>, vector<2x8x32xf32>
    %1 = vector.shape_cast %0 : vector<2x8x32xf32> to vector<16x32xf32>
    %c0_2 = arith.constant 0 : index
    %c0_3 = arith.constant 0 : index
    %2 = vector.load %arg3[%c0_2, %c0_3] : memref<32x96xf32, #tpu.memory_space<vmem>>, vector<32x96xf32>
    %cst = arith.constant dense<0.000000e+00> : vector<16x96xf32>
    %3 = tpu.matmul %1, %2, %cst {dimension_numbers = #tpu.dot_dimension_numbers<[1], [0], [0], [1], [0, 0, 1, 1], [], []>} : vector<16x32xf32>, vector<32x96xf32>, vector<16x96xf32> -> vector<16x96xf32>
    %4 = vector.extract_strided_slice %3 {offsets = [0, 0], sizes = [16, 8], strides = [1, 1]} : vector<16x96xf32> to vector<16x8xf32>
    %5 = vector.extract_strided_slice %3 {offsets = [0, 8], sizes = [16, 8], strides = [1, 1]} : vector<16x96xf32> to vector<16x8xf32>
    %6 = vector.extract_strided_slice %3 {offsets = [0, 16], sizes = [16, 8], strides = [1, 1]} : vector<16x96xf32> to vector<16x8xf32>
    %7 = vector.extract_strided_slice %3 {offsets = [0, 24], sizes = [16, 8], strides = [1, 1]} : vector<16x96xf32> to vector<16x8xf32>
    %8 = vector.shape_cast %4 : vector<16x8xf32> to vector<1x16x8xf32>
    %9 = vector.shape_cast %5 : vector<16x8xf32> to vector<1x16x8xf32>
    %10 = vector.shape_cast %6 : vector<16x8xf32> to vector<1x16x8xf32>
    %11 = vector.shape_cast %7 : vector<16x8xf32> to vector<1x16x8xf32>
    %12 = tpu.concatenate %8, %9, %10, %11 in 0 : vector<1x16x8xf32>, vector<1x16x8xf32>, vector<1x16x8xf32>, vector<1x16x8xf32> -> vector<4x16x8xf32>
    %13 = vector.shape_cast %12 : vector<4x16x8xf32> to vector<8x8x8xf32>
    %14 = vector.extract_strided_slice %3 {offsets = [0, 32], sizes = [16, 8], strides = [1, 1]} : vector<16x96xf32> to vector<16x8xf32>
    %15 = vector.extract_strided_slice %3 {offsets = [0, 40], sizes = [16, 8], strides = [1, 1]} : vector<16x96xf32> to vector<16x8xf32>
    %16 = vector.extract_strided_slice %3 {offsets = [0, 48], sizes = [16, 8], strides = [1, 1]} : vector<16x96xf32> to vector<16x8xf32>
    %17 = vector.extract_strided_slice %3 {offsets = [0, 56], sizes = [16, 8], strides = [1, 1]} : vector<16x96xf32> to vector<16x8xf32>
    %18 = vector.shape_cast %14 : vector<16x8xf32> to vector<1x16x8xf32>
    %19 = vector.shape_cast %15 : vector<16x8xf32> to vector<1x16x8xf32>
    %20 = vector.shape_cast %16 : vector<16x8xf32> to vector<1x16x8xf32>
    %21 = vector.shape_cast %17 : vector<16x8xf32> to vector<1x16x8xf32>
    %22 = tpu.concatenate %18, %19, %20, %21 in 0 : vector<1x16x8xf32>, vector<1x16x8xf32>, vector<1x16x8xf32>, vector<1x16x8xf32> -> vector<4x16x8xf32>
    %23 = vector.shape_cast %22 : vector<4x16x8xf32> to vector<8x8x8xf32>
    %24 = vector.extract_strided_slice %3 {offsets = [0, 64], sizes = [16, 8], strides = [1, 1]} : vector<16x96xf32> to vector<16x8xf32>
    %25 = vector.extract_strided_slice %3 {offsets = [0, 72], sizes = [16, 8], strides = [1, 1]} : vector<16x96xf32> to vector<16x8xf32>
    %26 = vector.extract_strided_slice %3 {offsets = [0, 80], sizes = [16, 8], strides = [1, 1]} : vector<16x96xf32> to vector<16x8xf32>
    %27 = vector.extract_strided_slice %3 {offsets = [0, 88], sizes = [16, 8], strides = [1, 1]} : vector<16x96xf32> to vector<16x8xf32>
    %28 = vector.shape_cast %24 : vector<16x8xf32> to vector<1x16x8xf32>
    %29 = vector.shape_cast %25 : vector<16x8xf32> to vector<1x16x8xf32>
    %30 = vector.shape_cast %26 : vector<16x8xf32> to vector<1x16x8xf32>
    %31 = vector.shape_cast %27 : vector<16x8xf32> to vector<1x16x8xf32>
    %32 = tpu.concatenate %28, %29, %30, %31 in 0 : vector<1x16x8xf32>, vector<1x16x8xf32>, vector<1x16x8xf32>, vector<1x16x8xf32> -> vector<4x16x8xf32>
    %33 = vector.shape_cast %32 : vector<4x16x8xf32> to vector<8x8x8xf32>
    %34 = tpu.iota {dimensions = array<i32: 0>} : vector<8x8xi32>
    %35 = tpu.iota {dimensions = array<i32: 1>} : vector<8x8xi32>
    %36 = arith.cmpi sle, %35, %34 : vector<8x8xi32>
    %37 = vector.shape_cast %36 : vector<8x8xi1> to vector<1x8x8xi1>
    "tpu.trace_start"() <{level = 10 : i32, message = "bqd,bkd->bqk"}> : () -> ()
    %cst_4 = arith.constant dense<0.000000e+00> : vector<8x8x8xf32>
    %38 = tpu.matmul %13, %23, %cst_4 {dimension_numbers = #tpu.dot_dimension_numbers<[2], [2], [1], [1], [0, 0, 0, 1, 1, 1], [0], [0]>} : vector<8x8x8xf32>, vector<8x8x8xf32>, vector<8x8x8xf32> -> vector<8x8x8xf32>
    %cst_5 = arith.constant 0xFF800000 : f32
    "tpu.trace_stop"() : () -> ()
    %39 = vector.shape_cast %37 : vector<1x8x8xi1> to vector<1x8x8xi1>
    %40 = vector.broadcast %39 : vector<1x8x8xi1> to vector<8x8x8xi1>
    %41 = vector.broadcast %cst_5 : f32 to vector<8x8x8xf32>
    %42 = arith.select %40, %38, %41 : vector<8x8x8xi1>, vector<8x8x8xf32>
    %cst_6 = arith.constant dense<0xFF800000> : vector<8x8xf32>
    %43 = vector.multi_reduction <maximumf>, %42, %cst_6 [2] : vector<8x8x8xf32> to vector<8x8xf32>
    %44 = vector.shape_cast %43 : vector<8x8xf32> to vector<8x8x1xf32>
    %45 = vector.broadcast %44 : vector<8x8x1xf32> to vector<8x8x8xf32>
    %46 = arith.subf %42, %45 : vector<8x8x8xf32>
    %47 = math.exp %46 : vector<8x8x8xf32>
    %cst_7 = arith.constant dense<0.000000e+00> : vector<8x8xf32>
    %48 = vector.multi_reduction <add>, %47, %cst_7 [2] : vector<8x8x8xf32> to vector<8x8xf32>
    %49 = vector.shape_cast %48 : vector<8x8xf32> to vector<8x8x1xf32>
    %50 = tpu.reciprocal %49 {approx = true} : vector<8x8x1xf32> -> vector<8x8x1xf32>
    %51 = vector.broadcast %50 : vector<8x8x1xf32> to vector<8x8x8xf32>
    %52 = arith.mulf %47, %51 : vector<8x8x8xf32>
    "tpu.trace_start"() <{level = 10 : i32, message = "bqk,bkd->bqd"}> : () -> ()
    %cst_8 = arith.constant dense<0.000000e+00> : vector<8x8x8xf32>
    %53 = tpu.matmul %52, %33, %cst_8 {dimension_numbers = #tpu.dot_dimension_numbers<[2], [1], [1], [2], [0, 0, 0, 1, 1, 2], [0], [0]>} : vector<8x8x8xf32>, vector<8x8x8xf32>, vector<8x8x8xf32> -> vector<8x8x8xf32>
    "tpu.trace_stop"() : () -> ()
    %54 = vector.shape_cast %53 : vector<8x8x8xf32> to vector<4x16x8xf32>
    %c0_9 = arith.constant 0 : index
    %c0_10 = arith.constant 0 : index
    %c0_11 = arith.constant 0 : index
    %55 = vector.load %arg4[%c0_9, %c0_10, %c0_11] : memref<4x8x32xf32, #tpu.memory_space<vmem>>, vector<4x8x32xf32>
    "tpu.trace_start"() <{level = 10 : i32, message = "hnd,hdc->hnc"}> : () -> ()
    %cst_12 = arith.constant dense<0.000000e+00> : vector<4x16x32xf32>
    %56 = tpu.matmul %54, %55, %cst_12 {dimension_numbers = #tpu.dot_dimension_numbers<[2], [1], [1], [2], [0, 0, 0, 1, 1, 2], [0], [0]>} : vector<4x16x8xf32>, vector<4x8x32xf32>, vector<4x16x32xf32> -> vector<4x16x32xf32>
    "tpu.trace_stop"() : () -> ()
    %57 = vector.extract_strided_slice %56 {offsets = [0, 0, 0], sizes = [1, 16, 32], strides = [1, 1, 1]} : vector<4x16x32xf32> to vector<1x16x32xf32>
    %58 = vector.shape_cast %57 : vector<1x16x32xf32> to vector<16x32xf32>
    %59 = vector.extract_strided_slice %56 {offsets = [1, 0, 0], sizes = [1, 16, 32], strides = [1, 1, 1]} : vector<4x16x32xf32> to vector<1x16x32xf32>
    %60 = vector.shape_cast %59 : vector<1x16x32xf32> to vector<16x32xf32>
    %61 = arith.addf %58, %60 : vector<16x32xf32>
    %62 = vector.extract_strided_slice %56 {offsets = [2, 0, 0], sizes = [1, 16, 32], strides = [1, 1, 1]} : vector<4x16x32xf32> to vector<1x16x32xf32>
    %63 = vector.shape_cast %62 : vector<1x16x32xf32> to vector<16x32xf32>
    %64 = arith.addf %61, %63 : vector<16x32xf32>
    %65 = vector.extract_strided_slice %56 {offsets = [3, 0, 0], sizes = [1, 16, 32], strides = [1, 1, 1]} : vector<4x16x32xf32> to vector<1x16x32xf32>
    %66 = vector.shape_cast %65 : vector<1x16x32xf32> to vector<16x32xf32>
    %67 = arith.addf %64, %66 : vector<16x32xf32>
    %c0_13 = arith.constant 0 : index
    %c0_14 = arith.constant 0 : index
    %68 = vector.load %arg5[%c0_13, %c0_14] : memref<1x32xf32, #tpu.memory_space<vmem>>, vector<1x32xf32>
    %69 = vector.broadcast %68 : vector<1x32xf32> to vector<16x32xf32>
    %70 = arith.addf %67, %69 : vector<16x32xf32>
    %c0_15 = arith.constant 0 : index
    %c0_16 = arith.constant 0 : index
    %71 = vector.load %arg6[%c0_15, %c0_16] : memref<1x32xf32, #tpu.memory_space<vmem>>, vector<1x32xf32>
    %c0_17 = arith.constant 0 : index
    %c0_18 = arith.constant 0 : index
    %72 = vector.load %arg7[%c0_17, %c0_18] : memref<1x32xf32, #tpu.memory_space<vmem>>, vector<1x32xf32>
    %cst_19 = arith.constant dense<0.000000e+00> : vector<16xf32>
    %73 = vector.multi_reduction <add>, %70, %cst_19 [1] : vector<16x32xf32> to vector<16xf32>
    %74 = vector.shape_cast %73 : vector<16xf32> to vector<16x1xf32>
    %cst_20 = arith.constant 3.200000e+01 : f32
    %75 = vector.broadcast %cst_20 : f32 to vector<16x1xf32>
    %76 = arith.divf %74, %75 : vector<16x1xf32>
    %77 = vector.broadcast %76 : vector<16x1xf32> to vector<16x32xf32>
    %78 = arith.subf %70, %77 : vector<16x32xf32>
    %79 = arith.mulf %78, %78 : vector<16x32xf32>
    %cst_21 = arith.constant dense<0.000000e+00> : vector<16xf32>
    %80 = vector.multi_reduction <add>, %79, %cst_21 [1] : vector<16x32xf32> to vector<16xf32>
    %81 = vector.shape_cast %80 : vector<16xf32> to vector<16x1xf32>
    %cst_22 = arith.constant 3.200000e+01 : f32
    %82 = vector.broadcast %cst_22 : f32 to vector<16x1xf32>
    %83 = arith.divf %81, %82 : vector<16x1xf32>
    %84 = vector.broadcast %76 : vector<16x1xf32> to vector<16x32xf32>
    %85 = arith.subf %70, %84 : vector<16x32xf32>
    %cst_23 = arith.constant 9.99999974E-6 : f32
    %86 = vector.broadcast %cst_23 : f32 to vector<16x1xf32>
    %87 = arith.addf %83, %86 : vector<16x1xf32>
    %88 = math.rsqrt %87 : vector<16x1xf32>
    %89 = vector.broadcast %88 : vector<16x1xf32> to vector<16x32xf32>
    %90 = arith.mulf %85, %89 : vector<16x32xf32>
    %91 = vector.broadcast %71 : vector<1x32xf32> to vector<16x32xf32>
    %92 = arith.mulf %90, %91 : vector<16x32xf32>
    %93 = vector.broadcast %72 : vector<1x32xf32> to vector<16x32xf32>
    %94 = arith.addf %92, %93 : vector<16x32xf32>
    %95 = arith.addf %1, %94 : vector<16x32xf32>
    %c0_24 = arith.constant 0 : index
    %c0_25 = arith.constant 0 : index
    %96 = vector.load %arg8[%c0_24, %c0_25] : memref<32x8xf32, #tpu.memory_space<vmem>>, vector<32x8xf32>
    %cst_26 = arith.constant dense<0.000000e+00> : vector<16x8xf32>
    %97 = tpu.matmul %95, %96, %cst_26 {dimension_numbers = #tpu.dot_dimension_numbers<[1], [0], [0], [1], [0, 0, 1, 1], [], []>} : vector<16x32xf32>, vector<32x8xf32>, vector<16x8xf32> -> vector<16x8xf32>
    %c0_27 = arith.constant 0 : index
    %c0_28 = arith.constant 0 : index
    %98 = vector.load %arg9[%c0_27, %c0_28] : memref<1x8xf32, #tpu.memory_space<vmem>>, vector<1x8xf32>
    %99 = vector.broadcast %98 : vector<1x8xf32> to vector<16x8xf32>
    %100 = arith.addf %97, %99 : vector<16x8xf32>
    %101 = vector.extract_strided_slice %100 {offsets = [0, 0], sizes = [16, 4], strides = [1, 1]} : vector<16x8xf32> to vector<16x4xf32>
    %102 = vector.extract_strided_slice %100 {offsets = [0, 4], sizes = [16, 4], strides = [1, 1]} : vector<16x8xf32> to vector<16x4xf32>
    %c0_29 = arith.constant 0 : index
    %c0_30 = arith.constant 0 : index
    %c0_31 = arith.constant 0 : index
    %103 = vector.load %arg2[%c0_29, %c0_30, %c0_31] : memref<2x8x4xf32, #tpu.memory_space<vmem>>, vector<2x8x4xf32>
    %104 = vector.shape_cast %103 : vector<2x8x4xf32> to vector<16x4xf32>
    %cst_32 = arith.constant 0.000000e+00 : f32
    %105 = vector.broadcast %cst_32 : f32 to vector<16x4xf32>
    %106 = arith.maximumf %102, %105 : vector<16x4xf32>
    %107 = math.absf %102 : vector<16x4xf32>
    %cst_33 = arith.constant 0.000000e+00 : f32
    %108 = vector.broadcast %cst_33 : f32 to vector<16x4xf32>
    %109 = arith.subf %108, %107 : vector<16x4xf32>
    %110 = math.exp %109 : vector<16x4xf32>
    %cst_34 = arith.constant 1.000000e+00 : f32
    %111 = vector.broadcast %cst_34 : f32 to vector<16x4xf32>
    %112 = arith.addf %111, %110 : vector<16x4xf32>
    %113 = math.log %112 : vector<16x4xf32>
    %114 = arith.addf %106, %113 : vector<16x4xf32>
    %115 = arith.mulf %104, %114 : vector<16x4xf32>
    %116 = arith.addf %101, %115 : vector<16x4xf32>
    %117 = tpu.iota {dimensions = array<i32: 1>} : vector<16x4xi32>
    %false = arith.constant false
    %118 = vector.broadcast %false : i1 to vector<16x4xi1>
    %cst_35 = arith.constant dense<0xFF800000> : vector<16xf32>
    %119 = vector.multi_reduction <maximumf>, %116, %cst_35 [1] : vector<16x4xf32> to vector<16xf32>
    %120 = vector.shape_cast %119 : vector<16xf32> to vector<16x1xf32>
    %121 = vector.broadcast %120 : vector<16x1xf32> to vector<16x4xf32>
    %122 = arith.cmpf oeq, %116, %121 : vector<16x4xf32>
    %c4_i32 = arith.constant 4 : i32
    %123 = vector.broadcast %c4_i32 : i32 to vector<16x4xi32>
    %124 = arith.select %122, %117, %123 : vector<16x4xi1>, vector<16x4xi32>
    %cst_36 = arith.constant dense<2147483647> : vector<16xi32>
    %125 = vector.multi_reduction <minsi>, %124, %cst_36 [1] : vector<16x4xi32> to vector<16xi32>
    %126 = vector.shape_cast %125 : vector<16xi32> to vector<16x1xi32>
    %127 = vector.broadcast %126 : vector<16x1xi32> to vector<16x4xi32>
    %128 = arith.cmpi eq, %117, %127 : vector<16x4xi32>
    %129 = arith.ori %118, %128 : vector<16x4xi1>
    %cst_37 = arith.constant 0xFF800000 : f32
    %130 = vector.broadcast %cst_37 : f32 to vector<16x4xf32>
    %131 = arith.select %128, %130, %116 : vector<16x4xi1>, vector<16x4xf32>
    %cst_38 = arith.constant dense<0xFF800000> : vector<16xf32>
    %132 = vector.multi_reduction <maximumf>, %131, %cst_38 [1] : vector<16x4xf32> to vector<16xf32>
    %133 = vector.shape_cast %132 : vector<16xf32> to vector<16x1xf32>
    %134 = vector.broadcast %133 : vector<16x1xf32> to vector<16x4xf32>
    %135 = arith.cmpf oeq, %131, %134 : vector<16x4xf32>
    %c4_i32_39 = arith.constant 4 : i32
    %136 = vector.broadcast %c4_i32_39 : i32 to vector<16x4xi32>
    %137 = arith.select %135, %117, %136 : vector<16x4xi1>, vector<16x4xi32>
    %cst_40 = arith.constant dense<2147483647> : vector<16xi32>
    %138 = vector.multi_reduction <minsi>, %137, %cst_40 [1] : vector<16x4xi32> to vector<16xi32>
    %139 = vector.shape_cast %138 : vector<16xi32> to vector<16x1xi32>
    %140 = vector.broadcast %139 : vector<16x1xi32> to vector<16x4xi32>
    %141 = arith.cmpi eq, %117, %140 : vector<16x4xi32>
    %142 = arith.ori %129, %141 : vector<16x4xi1>
    %cst_41 = arith.constant dense<0xFF800000> : vector<16xf32>
    %143 = vector.multi_reduction <maximumf>, %116, %cst_41 [1] : vector<16x4xf32> to vector<16xf32>
    %144 = vector.shape_cast %143 : vector<16xf32> to vector<16x1xf32>
    %145 = vector.broadcast %144 : vector<16x1xf32> to vector<16x4xf32>
    %146 = arith.subf %116, %145 : vector<16x4xf32>
    %147 = math.exp %146 : vector<16x4xf32>
    %cst_42 = arith.constant 0.000000e+00 : f32
    %148 = vector.broadcast %cst_42 : f32 to vector<16x4xf32>
    %149 = arith.select %142, %147, %148 : vector<16x4xi1>, vector<16x4xf32>
    %cst_43 = arith.constant dense<0.000000e+00> : vector<16xf32>
    %150 = vector.multi_reduction <add>, %149, %cst_43 [1] : vector<16x4xf32> to vector<16xf32>
    %151 = vector.shape_cast %150 : vector<16xf32> to vector<16x1xf32>
    %152 = tpu.reciprocal %151 {approx = true} : vector<16x1xf32> -> vector<16x1xf32>
    %153 = vector.broadcast %152 : vector<16x1xf32> to vector<16x4xf32>
    %154 = arith.mulf %149, %153 : vector<16x4xf32>
    %c0_44 = arith.constant 0 : index
    %c0_45 = arith.constant 0 : index
    %155 = vector.load %arg10[%c0_44, %c0_45] : memref<32x768xf32, #tpu.memory_space<vmem>>, vector<32x768xf32>
    %cst_46 = arith.constant dense<0.000000e+00> : vector<16x768xf32>
    %156 = tpu.matmul %95, %155, %cst_46 {dimension_numbers = #tpu.dot_dimension_numbers<[1], [0], [0], [1], [0, 0, 1, 1], [], []>} : vector<16x32xf32>, vector<32x768xf32>, vector<16x768xf32> -> vector<16x768xf32>
    %c0_47 = arith.constant 0 : index
    %c0_48 = arith.constant 0 : index
    %157 = vector.load %arg11[%c0_47, %c0_48] : memref<1x768xf32, #tpu.memory_space<vmem>>, vector<1x768xf32>
    %158 = vector.broadcast %157 : vector<1x768xf32> to vector<16x768xf32>
    %159 = arith.addf %156, %158 : vector<16x768xf32>
    %cst_49 = arith.constant 5.000000e-01 : f32
    %160 = vector.broadcast %cst_49 : f32 to vector<16x768xf32>
    %161 = arith.mulf %160, %159 : vector<16x768xf32>
    %cst_50 = arith.constant 4.471500e-02 : f32
    %162 = vector.broadcast %cst_50 : f32 to vector<16x768xf32>
    %163 = arith.mulf %162, %159 : vector<16x768xf32>
    %164 = arith.mulf %163, %159 : vector<16x768xf32>
    %165 = arith.mulf %164, %159 : vector<16x768xf32>
    %166 = arith.addf %159, %165 : vector<16x768xf32>
    %cst_51 = arith.constant 0.797884583 : f32
    %167 = vector.broadcast %cst_51 : f32 to vector<16x768xf32>
    %168 = arith.mulf %167, %166 : vector<16x768xf32>
    %169 = math.tanh %168 : vector<16x768xf32>
    %cst_52 = arith.constant 1.000000e+00 : f32
    %170 = vector.broadcast %cst_52 : f32 to vector<16x768xf32>
    %171 = arith.addf %170, %169 : vector<16x768xf32>
    %172 = arith.mulf %161, %171 : vector<16x768xf32>
    %173 = vector.extract_strided_slice %154 {offsets = [0, 0], sizes = [16, 1], strides = [1, 1]} : vector<16x4xf32> to vector<16x1xf32>
    %174 = vector.shape_cast %173 : vector<16x1xf32> to vector<16x1xf32>
    %175 = vector.broadcast %174 : vector<16x1xf32> to vector<16x128xf32>
    %176 = vector.extract_strided_slice %154 {offsets = [0, 1], sizes = [16, 1], strides = [1, 1]} : vector<16x4xf32> to vector<16x1xf32>
    %177 = vector.shape_cast %176 : vector<16x1xf32> to vector<16x1xf32>
    %178 = vector.broadcast %177 : vector<16x1xf32> to vector<16x128xf32>
    %179 = vector.extract_strided_slice %154 {offsets = [0, 2], sizes = [16, 1], strides = [1, 1]} : vector<16x4xf32> to vector<16x1xf32>
    %180 = vector.shape_cast %179 : vector<16x1xf32> to vector<16x1xf32>
    %181 = vector.broadcast %180 : vector<16x1xf32> to vector<16x128xf32>
    %182 = vector.extract_strided_slice %154 {offsets = [0, 3], sizes = [16, 1], strides = [1, 1]} : vector<16x4xf32> to vector<16x1xf32>
    %183 = vector.shape_cast %182 : vector<16x1xf32> to vector<16x1xf32>
    %184 = vector.broadcast %183 : vector<16x1xf32> to vector<16x128xf32>
    %cst_53 = arith.constant 1.000000e+00 : f32
    %185 = vector.broadcast %cst_53 : f32 to vector<16x256xf32>
    %186 = tpu.concatenate %175, %178, %181, %184, %185 in 1 : vector<16x128xf32>, vector<16x128xf32>, vector<16x128xf32>, vector<16x128xf32>, vector<16x256xf32> -> vector<16x768xf32>
    %187 = arith.mulf %172, %186 : vector<16x768xf32>
    %c0_54 = arith.constant 0 : index
    %c0_55 = arith.constant 0 : index
    %188 = vector.load %arg12[%c0_54, %c0_55] : memref<768x32xf32, #tpu.memory_space<vmem>>, vector<768x32xf32>
    %cst_56 = arith.constant dense<0.000000e+00> : vector<16x32xf32>
    %189 = tpu.matmul %187, %188, %cst_56 {dimension_numbers = #tpu.dot_dimension_numbers<[1], [0], [0], [1], [0, 0, 1, 1], [], []>} : vector<16x768xf32>, vector<768x32xf32>, vector<16x32xf32> -> vector<16x32xf32>
    %c0_57 = arith.constant 0 : index
    %c0_58 = arith.constant 0 : index
    %190 = vector.load %arg13[%c0_57, %c0_58] : memref<4x32xf32, #tpu.memory_space<vmem>>, vector<4x32xf32>
    %cst_59 = arith.constant dense<0.000000e+00> : vector<16x32xf32>
    %191 = tpu.matmul %154, %190, %cst_59 {dimension_numbers = #tpu.dot_dimension_numbers<[1], [0], [0], [1], [0, 0, 1, 1], [], []>} : vector<16x4xf32>, vector<4x32xf32>, vector<16x32xf32> -> vector<16x32xf32>
    %192 = arith.addf %189, %191 : vector<16x32xf32>
    %c0_60 = arith.constant 0 : index
    %c0_61 = arith.constant 0 : index
    %193 = vector.load %arg14[%c0_60, %c0_61] : memref<1x32xf32, #tpu.memory_space<vmem>>, vector<1x32xf32>
    %194 = vector.broadcast %193 : vector<1x32xf32> to vector<16x32xf32>
    %195 = arith.addf %192, %194 : vector<16x32xf32>
    %c0_62 = arith.constant 0 : index
    %c0_63 = arith.constant 0 : index
    %196 = vector.load %arg15[%c0_62, %c0_63] : memref<1x32xf32, #tpu.memory_space<vmem>>, vector<1x32xf32>
    %c0_64 = arith.constant 0 : index
    %c0_65 = arith.constant 0 : index
    %197 = vector.load %arg16[%c0_64, %c0_65] : memref<1x32xf32, #tpu.memory_space<vmem>>, vector<1x32xf32>
    %cst_66 = arith.constant dense<0.000000e+00> : vector<16xf32>
    %198 = vector.multi_reduction <add>, %195, %cst_66 [1] : vector<16x32xf32> to vector<16xf32>
    %199 = vector.shape_cast %198 : vector<16xf32> to vector<16x1xf32>
    %cst_67 = arith.constant 3.200000e+01 : f32
    %200 = vector.broadcast %cst_67 : f32 to vector<16x1xf32>
    %201 = arith.divf %199, %200 : vector<16x1xf32>
    %202 = vector.broadcast %201 : vector<16x1xf32> to vector<16x32xf32>
    %203 = arith.subf %195, %202 : vector<16x32xf32>
    %204 = arith.mulf %203, %203 : vector<16x32xf32>
    %cst_68 = arith.constant dense<0.000000e+00> : vector<16xf32>
    %205 = vector.multi_reduction <add>, %204, %cst_68 [1] : vector<16x32xf32> to vector<16xf32>
    %206 = vector.shape_cast %205 : vector<16xf32> to vector<16x1xf32>
    %cst_69 = arith.constant 3.200000e+01 : f32
    %207 = vector.broadcast %cst_69 : f32 to vector<16x1xf32>
    %208 = arith.divf %206, %207 : vector<16x1xf32>
    %209 = vector.broadcast %201 : vector<16x1xf32> to vector<16x32xf32>
    %210 = arith.subf %195, %209 : vector<16x32xf32>
    %cst_70 = arith.constant 9.99999974E-6 : f32
    %211 = vector.broadcast %cst_70 : f32 to vector<16x1xf32>
    %212 = arith.addf %208, %211 : vector<16x1xf32>
    %213 = math.rsqrt %212 : vector<16x1xf32>
    %214 = vector.broadcast %213 : vector<16x1xf32> to vector<16x32xf32>
    %215 = arith.mulf %210, %214 : vector<16x32xf32>
    %216 = vector.broadcast %196 : vector<1x32xf32> to vector<16x32xf32>
    %217 = arith.mulf %215, %216 : vector<16x32xf32>
    %218 = vector.broadcast %197 : vector<1x32xf32> to vector<16x32xf32>
    %219 = arith.addf %217, %218 : vector<16x32xf32>
    %220 = arith.addf %95, %219 : vector<16x32xf32>
    %221 = vector.shape_cast %220 : vector<16x32xf32> to vector<2x8x32xf32>
    %c0_71 = arith.constant 0 : index
    %c0_72 = arith.constant 0 : index
    %c0_73 = arith.constant 0 : index
    %222 = vector.load %arg17[%c0_71, %c0_72, %c0_73] : memref<2x8x32xf32, #tpu.memory_space<vmem>>, vector<2x8x32xf32>
    tpu.vector_store %arg17[%c0_71, %c0_72, %c0_73], %221 {strides = array<i32>} : memref<2x8x32xf32, #tpu.memory_space<vmem>>, vector<2x8x32xf32>,
    return
  }
  func.func @transform_0(%arg0: i32) -> (i32, i32, i32) {
    %c0_i32 = arith.constant 0 : i32
    %c0_i32_0 = arith.constant 0 : i32
    %c0_i32_1 = arith.constant 0 : i32
    return %arg0, %c0_i32, %c0_i32_0 : i32, i32, i32
  }
  func.func @transform_1(%arg0: i32) -> (i32, i32, i32) {
    %c0_i32 = arith.constant 0 : i32
    %c0_i32_0 = arith.constant 0 : i32
    %c0_i32_1 = arith.constant 0 : i32
    return %arg0, %c0_i32, %c0_i32_0 : i32, i32, i32
  }
  func.func @transform_2(%arg0: i32) -> (i32, i32) {
    %c0_i32 = arith.constant 0 : i32
    %c0_i32_0 = arith.constant 0 : i32
    %c0_i32_1 = arith.constant 0 : i32
    return %c0_i32, %c0_i32_0 : i32, i32
  }
  func.func @transform_3(%arg0: i32) -> (i32, i32, i32) {
    %c0_i32 = arith.constant 0 : i32
    %c0_i32_0 = arith.constant 0 : i32
    %c0_i32_1 = arith.constant 0 : i32
    %c0_i32_2 = arith.constant 0 : i32
    return %c0_i32, %c0_i32_0, %c0_i32_1 : i32, i32, i32
  }
  func.func @transform_4(%arg0: i32) -> (i32, i32) {
    %c0_i32 = arith.constant 0 : i32
    %c0_i32_0 = arith.constant 0 : i32
    %c0_i32_1 = arith.constant 0 : i32
    return %c0_i32, %c0_i32_0 : i32, i32
  }
  func.func @transform_5(%arg0: i32) -> (i32, i32) {
    %c0_i32 = arith.constant 0 : i32
    %c0_i32_0 = arith.constant 0 : i32
    %c0_i32_1 = arith.constant 0 : i32
    return %c0_i32, %c0_i32_0 : i32, i32
  }
  func.func @transform_6(%arg0: i32) -> (i32, i32) {
    %c0_i32 = arith.constant 0 : i32
    %c0_i32_0 = arith.constant 0 : i32
    %c0_i32_1 = arith.constant 0 : i32
    return %c0_i32, %c0_i32_0 : i32, i32
  }
  func.func @transform_7(%arg0: i32) -> (i32, i32) {
    %c0_i32 = arith.constant 0 : i32
    %c0_i32_0 = arith.constant 0 : i32
    %c0_i32_1 = arith.constant 0 : i32
    return %c0_i32, %c0_i32_0 : i32, i32
  }
  func.func @transform_8(%arg0: i32) -> (i32, i32) {
    %c0_i32 = arith.constant 0 : i32
    %c0_i32_0 = arith.constant 0 : i32
    %c0_i32_1 = arith.constant 0 : i32
    return %c0_i32, %c0_i32_0 : i32, i32
  }
  func.func @transform_9(%arg0: i32) -> (i32, i32) {
    %c0_i32 = arith.constant 0 : i32
    %c0_i32_0 = arith.constant 0 : i32
    %c0_i32_1 = arith.constant 0 : i32
    return %c0_i32, %c0_i32_0 : i32, i32
  }
  func.func @transform_10(%arg0: i32) -> (i32, i32) {
    %c0_i32 = arith.constant 0 : i32
    %c0_i32_0 = arith.constant 0 : i32
    %c0_i32_1 = arith.constant 0 : i32
    return %c0_i32, %c0_i32_0 : i32, i32
  }
  func.func @transform_11(%arg0: i32) -> (i32, i32) {
    %c0_i32 = arith.constant 0 : i32
    %c0_i32_0 = arith.constant 0 : i32
    %c0_i32_1 = arith.constant 0 : i32
    return %c0_i32, %c0_i32_0 : i32, i32
  }
  func.func @transform_12(%arg0: i32) -> (i32, i32) {
    %c0_i32 = arith.constant 0 : i32
    %c0_i32_0 = arith.constant 0 : i32
    %c0_i32_1 = arith.constant 0 : i32
    return %c0_i32, %c0_i32_0 : i32, i32
  }
  func.func @transform_13(%arg0: i32) -> (i32, i32) {
    %c0_i32 = arith.constant 0 : i32
    %c0_i32_0 = arith.constant 0 : i32
    %c0_i32_1 = arith.constant 0 : i32
    return %c0_i32, %c0_i32_0 : i32, i32
  }
  func.func @transform_14(%arg0: i32) -> (i32, i32) {
    %c0_i32 = arith.constant 0 : i32
    %c0_i32_0 = arith.constant 0 : i32
    %c0_i32_1 = arith.constant 0 : i32
    return %c0_i32, %c0_i32_0 : i32, i32
  }
  func.func @transform_15(%arg0: i32) -> (i32, i32) {
    %c0_i32 = arith.constant 0 : i32
    %c0_i32_0 = arith.constant 0 : i32
    %c0_i32_1 = arith.constant 0 : i32
    return %c0_i32, %c0_i32_0 : i32, i32
  }
  func.func @transform_16(%arg0: i32) -> (i32, i32, i32) {
    %c0_i32 = arith.constant 0 : i32
    %c0_i32_0 = arith.constant 0 : i32
    %c0_i32_1 = arith.constant 0 : i32
    return %arg0, %c0_i32, %c0_i32_0 : i32, i32, i32
  }
}

</mosaic_0001>

<bundles_post_ra>
// kernel: tpu_custom_call.1
= control target key start
LH: loop header
LB: loop body
LE: loop exit
PB: predicated region body
PF: predicated region fallthrough
CT: control target
= control target key end

     0   :  { %s4608_s0 = inlined_call_operand.vmem [shape: f32[2,8,32], index: 0, kind: input, shape index: {}]   ;;  %s4609_s1 = inlined_call_operand.vmem [shape: f32[2,8,4], index: 1, kind: input, shape index: {}]   ;;  %s4610_s2 = inlined_call_operand.vmem [shape: f32[32,96], index: 2, kind: input, shape index: {}]   ;;  %s4611_s3 = inlined_call_operand.vmem [shape: f32[4,8,32], index: 3, kind: input, shape index: {}]   ;;  %s4612_s4 = inlined_call_operand.vmem [shape: f32[1,32], index: 4, kind: input, shape index: {}]   ;;  %s4613_s5 = inlined_call_operand.vmem [shape: f32[1,32], index: 5, kind: input, shape index: {}]   ;;  %s4614_s6 = inlined_call_operand.vmem [shape: f32[1,32], index: 6, kind: input, shape index: {}]   ;;  %s4615_s7 = inlined_call_operand.vmem [shape: f32[32,8], index: 7, kind: input, shape index: {}]   ;;  %s4616_s8 = inlined_call_operand.vmem [shape: f32[1,8], index: 8, kind: input, shape index: {}]   ;;  %s4617_s9 = inlined_call_operand.vmem [shape: f32[32,768], index: 9, kind: input, shape index: {}]   ;;  %s4618_s10 = inlined_call_operand.vmem [shape: f32[1,768], index: 10, kind: input, shape index: {}]   ;;  %s4619_s11 = inlined_call_operand.vmem [shape: f32[768,32], index: 11, kind: input, shape index: {}]   ;;  %s4620_s12 = inlined_call_operand.vmem [shape: f32[4,32], index: 12, kind: input, shape index: {}]   ;;  %s4621_s13 = inlined_call_operand.vmem [shape: f32[1,32], index: 13, kind: input, shape index: {}]   ;;  %s4622_s14 = inlined_call_operand.vmem [shape: f32[1,32], index: 14, kind: input, shape index: {}]   ;;  %s4623_s15 = inlined_call_operand.vmem [shape: f32[1,32], index: 15, kind: input, shape index: {}]   ;;  %s4624_s16 = inlined_call_operand.hbm [shape: f32[2,8,32], index: 16, kind: output, shape index: {}]  }
   0x1   :  { %4626 = sst [smem:[#allocation5_spill]] %s4608_s0 }
   0x2   :  { %v56_v0 = vld [vmem:[%s4610_s2] sm:$0xff]  ;;  %v57_v1 = vld [vmem:[%s4610_s2 + $0x8] sm:$0xff]  ;;  %v58_v2 = vld [vmem:[%s4610_s2 + $0x10] sm:$0xff]  ;;  %vm60_vm0 = vcmask 261120   ;;  %s4627_s0 = sld [smem:[#allocation5_spill]] }
   0x3   :  { %v3364_v3 = vpack.c.bf16 %v57_v1, %v56_v0  ;;  %v59_v4 = vld [vmem:[%s4610_s2 + $0x18] sm:$0xff] }
   0x4   :  { %v3368_v6 = vpack.c.bf16 %v59_v4, %v58_v2 }
   0x8   :  { %v3746_v5 = vld [vmem:[%s4627_s0] sm:$0xff] }
   0x9   :  { %3245 = vmatprep.mubr.msk.f32.mxu0 %vm60_vm0, %v3746_v5 }
   0xa   :  { %21 = vsyncpa [#allocation3], 0  ;;  %3365 = vmatprep.subr.bf16.mxu0 %v3364_v3  ;;  %v3753_v7 = vld [vmem:[%s4627_s0 + $0x8] sm:$0xff]  ;;  %v3631_v8 = vmov 0.0   ;;  %s3632_s2 = smov 112   ;;  %s3633_s19 = smov 120   ;;  %v156_v26 = vlaneseq }
   0xb   :  { %3367 = vmatpush3.bf16.msra.mxu0 %v3364_v3  ;;  %3253 = vmatprep.subr.mxu1 %v3631_v8  ;;  %vm3634_vm1 = vmmov 0   ;;  %s3635_s20 = smov 104   ;;  %s3636_s21 = smov 96   ;;  %vm163_vm2 = vcmask 64512   ;;  %vm1990_vm4 = vcmask 31744  }
   0xc   :  { %3369 = vmatprep.subr.bf16.mxu0 %v3368_v6  ;;  %3255 = vmatprep.mubr.msk.f32.mxu1 %vm3634_vm1, %v3631_v8  ;;  %s3637_s22 = smov 64   ;;  %v3836_v27 = vshrl.u32 %v156_v26, 7  ;;  %v3838_v28 = vand.u32 127, %v156_v26 }
   0xe   :  { %vm3842_vm3 = vcmp.le.s32.totalorder %v3838_v28, %v3836_v27 }
   0xf   :  { %3371 = vmatpush3.bf16.msra.mxu0 %v3368_v6 }
  0x10   :  { %3248 = vmatprep.subr.mxu0 %v3631_v8 }
  0x12   :  { %3246 = vmatmul.mubr.msk.f32.vlgmr.msra.gmra.mrb[0].mxu0 %vm60_vm0, %v3753_v7 }
  0x13   :  { %3250 = vmatprep.mubr.msk.f32.mxu0 %vm3634_vm1, %v3631_v8 }
  0xe5   :  { %v3759_v9 = vpop.f32.mrb[0].mxu0 }
  0xe6   :  { %v133_v10 = vpop.f32.mrb[1].mxu0 }
  0xe7   :  { %148 = vrot.lane.b32.xlu1 %v133_v10, %s3632_s2  ;;  %144 = vrot.lane.b32.xlu0 %v133_v10, %s3633_s19 }
  0xeb   :  { %150 = vrot.lane.b32.xlu1 %v3759_v9, %s3632_s2  ;;  %146 = vrot.lane.b32.xlu0 %v3759_v9, %s3633_s19  ;;  %s3643_s19 = smov [#allocation2]  }
  0xef   :  { %154 = vrot.lane.b32.xlu1 %v3759_v9, %s3635_s20  ;;  %152 = vrot.lane.b32.xlu0 %v133_v10, %s3635_s20 }
  0xf3   :  { %238 = vrot.lane.b32.xlu1 %v3759_v9, %s3636_s21  ;;  %161 = vrot.lane.b32.xlu0 %v133_v10, %s3636_s21 }
 0x159   :  { %v3769_v11 = vpop.permute.xlu1 %148  ;;  %v3771_v12 = vpop.permute.xlu0 %144 }
 0x15a   :  { %314 = vrot.lane.b32.xlu0 %v3771_v12, %s3636_s21 }
 0x15d   :  { %v3774_v13 = vpop.permute.xlu1 %150  ;;  %v3776_v14 = vpop.permute.xlu0 %146 }
 0x15e   :  { %466 = vrot.lane.b32.xlu0 %v3769_v11, %s3636_s21  ;;  %390 = vrot.lane.b32.xlu1 %v3776_v14, %s3636_s21 }
 0x161   :  { %v3780_v15 = vpop.permute.xlu1 %154  ;;  %v3782_v16 = vpop.permute.xlu0 %152 }
 0x162   :  { %542 = vrot.lane.b32.xlu1 %v3774_v13, %s3636_s21  ;;  %618 = vrot.lane.b32.xlu0 %v3782_v16, %s3636_s21 }
 0x165   :  { %v239_v17 = vpop.permute.xlu1 %238  ;;  %v162_v18 = vpop.permute.xlu0 %161 }
 0x166   :  { %3254 = vmatpush3.xpose.msk.msra.mxu1 %vm163_vm2, %v239_v17  ;;  %694 = vrot.lane.b32.xlu1 %v3780_v15, %s3636_s21 }
 0x167   :  { %3249 = vmatpush3.xpose.msk.msra.mxu0 %vm163_vm2, %v162_v18  ;;  %3263 = vmatprep.subr.mxu1 %v3631_v8 }
 0x168   :  { %3258 = vmatprep.subr.mxu0 %v3631_v8 }
 0x169   :  { %3256 = vmatmul.mubr.msk.f32.vlgmr.msra.gmra.mrb[0].mxu1 %vm163_vm2, %v3759_v9 }
 0x16a   :  { %3251 = vmatmul.mubr.msk.f32.vlgmr.msra.gmra.mrb[2].mxu0 %vm163_vm2, %v133_v10  ;;  %868 = vrot.lane.b32.xlu1 %v133_v10, %s3637_s22 }
 0x16b   :  { %3260 = vmatprep.mubr.msk.f32.mxu0 %vm3634_vm1, %v3631_v8  ;;  %3265 = vmatprep.mubr.msk.f32.mxu1 %vm3634_vm1, %v3631_v8 }
 0x1cc   :  { %v315_v19 = vpop.permute.xlu0 %314 }
 0x1cd   :  { %3259 = vmatpush3.xpose.msk.msra.mxu0 %vm163_vm2, %v315_v19 }
 0x1ce   :  { %3268 = vmatprep.subr.mxu0 %v3631_v8 }
 0x1d0   :  { %v391_v20 = vpop.permute.xlu1 %390  ;;  %3261 = vmatmul.mubr.msk.f32.vlgmr.msra.gmra.mrb[4].mxu0 %vm163_vm2, %v3771_v12  ;;  %v467_v21 = vpop.permute.xlu0 %466 }
 0x1d1   :  { %3264 = vmatpush3.xpose.msk.msra.mxu1 %vm163_vm2, %v391_v20  ;;  %3269 = vmatpush3.xpose.msk.msra.mxu0 %vm163_vm2, %v467_v21 }
 0x1d2   :  { %3270 = vmatprep.mubr.msk.f32.mxu0 %vm3634_vm1, %v3631_v8  ;;  %3273 = vmatprep.subr.mxu1 %v3631_v8 }
 0x1d3   :  { %3278 = vmatprep.subr.mxu0 %v3631_v8 }
 0x1d4   :  { %3266 = vmatmul.mubr.msk.f32.vlgmr.msra.gmra.mrb[2].mxu1 %vm163_vm2, %v3776_v14  ;;  %v543_v22 = vpop.permute.xlu1 %542  ;;  %3271 = vmatmul.mubr.msk.f32.vlgmr.msra.gmra.mrb[6].mxu0 %vm163_vm2, %v3769_v11  ;;  %v619_v23 = vpop.permute.xlu0 %618 }
 0x1d5   :  { %3274 = vmatpush3.xpose.msk.msra.mxu1 %vm163_vm2, %v543_v22  ;;  %3279 = vmatpush3.xpose.msk.msra.mxu0 %vm163_vm2, %v619_v23 }
 0x1d6   :  { %3275 = vmatprep.mubr.msk.f32.mxu1 %vm3634_vm1, %v3631_v8  ;;  %3280 = vmatprep.mubr.msk.f32.mxu0 %vm3634_vm1, %v3631_v8 }
 0x1d7   :  { %3283 = vmatprep.subr.mxu1 %v3631_v8  ;;  %3288 = vmatprep.subr.mxu0 %v3631_v8 }
 0x1d8   :  { %3276 = vmatmul.mubr.msk.f32.vlgmr.msra.gmra.mrb[4].mxu1 %vm163_vm2, %v3774_v13  ;;  %v695_v24 = vpop.permute.xlu1 %694  ;;  %3281 = vmatmul.mubr.msk.f32.vlgmr.msra.gmra.mrb[8].mxu0 %vm163_vm2, %v3782_v16 }
 0x1d9   :  { %3284 = vmatpush3.xpose.msk.msra.mxu1 %vm163_vm2, %v695_v24  ;;  %3285 = vmatprep.mubr.msk.f32.mxu1 %vm3634_vm1, %v3631_v8 }
 0x1da   :  { %3293 = vmatprep.subr.mxu1 %v3631_v8  ;;  %3290 = vmatprep.mubr.msk.f32.mxu0 %vm3634_vm1, %v3631_v8 }
 0x1dc   :  { %3286 = vmatmul.mubr.msk.f32.vlgmr.msra.gmra.mrb[6].mxu1 %vm163_vm2, %v3780_v15  ;;  %v869_v25 = vpop.permute.xlu1 %868 }
 0x1dd   :  { %3289 = vmatpush3.msra.mxu0 %v869_v25  ;;  %3295 = vmatprep.mubr.msk.f32.mxu1 %vm3634_vm1, %v3631_v8 }
 0x1de   :  { %3298 = vmatprep.subr.mxu0 %v3631_v8 }
 0x23c   :  { %v310_v30 = vpop.f32.mrb[0].mxu1 }
 0x23d   :  { %v234_v31 = vpop.f32.mrb[2].mxu0  ;;  %v773_v32 = vsel %vm3842_vm3, %v310_v30, -inf  ;;  %v3257_v33 = vpop.f32.mrb[1].mxu1 }
 0x23e   :  { %v772_v34 = vsel %vm3842_vm3, %v234_v31, -inf  ;;  %v3252_v35 = vpop.f32.mrb[3].mxu0  ;;  %v783_v36 = vsel %vm163_vm2, %v773_v32, -inf }
 0x23f   :  { %784 = vmax.xlane.f32.xlu1 %v783_v36  ;;  %v780_v37 = vsel %vm163_vm2, %v772_v34, -inf }
 0x240   :  { %781 = vmax.xlane.f32.xlu0 %v780_v37 }
 0x2a3   :  { %v386_v38 = vpop.f32.mrb[4].mxu0 }
 0x2a4   :  { %v3262_v39 = vpop.f32.mrb[5].mxu0  ;;  %v774_v48 = vsel %vm3842_vm3, %v386_v38, -inf }
 0x2a5   :  { %v786_v53 = vsel %vm163_vm2, %v774_v48, -inf }
 0x2a7   :  { %v462_v40 = vpop.f32.mrb[2].mxu1  ;;  %v538_v41 = vpop.f32.mrb[6].mxu0 }
 0x2a8   :  { %v775_v42 = vsel %vm3842_vm3, %v462_v40, -inf  ;;  %v776_v43 = vsel %vm3842_vm3, %v538_v41, -inf  ;;  %v3267_v44 = vpop.f32.mrb[3].mxu1  ;;  %v3272_v45 = vpop.f32.mrb[7].mxu0 }
 0x2a9   :  { %v789_v46 = vsel %vm163_vm2, %v775_v42, -inf  ;;  %v792_v47 = vsel %vm163_vm2, %v776_v43, -inf }
 0x2aa   :  { %790 = vmax.xlane.f32.xlu0 %v789_v46  ;;  %793 = vmax.xlane.f32.xlu1 %v792_v47 }
 0x2ab   :  { %v614_v49 = vpop.f32.mrb[4].mxu1  ;;  %v690_v50 = vpop.f32.mrb[8].mxu0 }
 0x2ac   :  { %v3277_v51 = vpop.f32.mrb[5].mxu1  ;;  %v3282_v52 = vpop.f32.mrb[9].mxu0  ;;  %v777_v54 = vsel %vm3842_vm3, %v614_v49, -inf  ;;  %v778_v63 = vsel %vm3842_vm3, %v690_v50, -inf }
 0x2ad   :  { %v795_v57 = vsel %vm163_vm2, %v777_v54, -inf  ;;  %v798_v0 = vsel %vm163_vm2, %v778_v63, -inf }
 0x2ae   :  { %787 = vmax.xlane.f32.xlu0 %v786_v53 }
 0x2af   :  { %v766_v55 = vpop.f32.mrb[6].mxu1 }
 0x2b0   :  { %v3287_v56 = vpop.f32.mrb[7].mxu1  ;;  %v779_v58 = vsel %vm3842_vm3, %v766_v55, -inf }
 0x2b1   :  { %v801_v59 = vsel %vm163_vm2, %v779_v58, -inf }
 0x2b2   :  { %796 = vmax.xlane.f32.xlu0 %v795_v57 }
 0x2b6   :  { %802 = vmax.xlane.f32.xlu0 %v801_v59 }
 0x2bb   :  { %1020 = vrot.lane.b32.xlu1 %v3771_v12, %s3637_s22 }
 0x2cc   :  { %944 = vrot.lane.b32.xlu0 %v3759_v9, %s3637_s22  ;;  %v785_v60 = vpop.xlane.xlu1 %784 }
 0x2cd   :  { %v805_v61 = vsub.f32 %v773_v32, %v785_v60  ;;  %v782_v3 = vpop.xlane.xlu0 %781 }
 0x2ce   :  { %v804_v4 = vsub.f32 %v772_v34, %v782_v3 }
 0x2cf   :  { %v814_v62 = vmul.f32 1.442695, %v805_v61 }
 0x2d0   :  { %v812_v6 = vmul.f32 1.442695, %v804_v4 }
 0x2d1   :  { %3527 = vpow2.f32 %v814_v62 }
 0x2d2   :  { %3529 = vpow2.f32 %v812_v6 }
 0x2db   :  { %v3528_v1 = vpop.eup %3527 }
 0x2dc   :  { %v831_v2 = vsel %vm163_vm2, %v3528_v1, 0.0  ;;  %v3877_v9 = vpop.eup %3529 }
 0x2dd   :  { %v828_v10 = vsel %vm163_vm2, %v3877_v9, 0.0 }
 0x2df   :  { %799 = vmax.xlane.f32.xlu1 %v798_v0 }
 0x2eb   :  { %832 = vadd.xlane.f32.xlu0 %v831_v2  ;;  %v1476_v2 = vld [vmem:[%s4611_s3] sm:$0xff] }
 0x2f0   :  { %1096 = vrot.lane.b32.xlu1 %v3776_v14, %s3637_s22 }
 0x314   :  { %829 = vadd.xlane.f32.xlu1 %v828_v10 }
 0x325   :  { %1248 = vrot.lane.b32.xlu1 %v3774_v13, %s3637_s22 }
 0x337   :  { %v794_v12 = vpop.xlane.xlu1 %793  ;;  %v791_v17 = vpop.xlane.xlu0 %790 }
 0x338   :  { %v807_v18 = vsub.f32 %v775_v42, %v791_v17  ;;  %v808_v19 = vsub.f32 %v776_v43, %v794_v12 }
 0x33a   :  { %v818_v20 = vmul.f32 1.442695, %v807_v18  ;;  %v820_v22 = vmul.f32 1.442695, %v808_v19  ;;  %v1477_v19 = vld [vmem:[%s4611_s3 + $0x8] sm:$0xff] }
 0x33b   :  { %v788_v21 = vpop.xlane.xlu0 %787  ;;  %v1021_v34 = vpop.permute.xlu1 %1020 }
 0x33c   :  { %v806_v14 = vsub.f32 %v774_v48, %v788_v21  ;;  %3531 = vpow2.f32 %v818_v20 }
 0x33e   :  { %v816_v23 = vmul.f32 1.442695, %v806_v14 }
 0x33f   :  { %v797_v24 = vpop.xlane.xlu0 %796 }
 0x340   :  { %3533 = vpow2.f32 %v816_v23  ;;  %v809_v35 = vsub.f32 %v777_v54, %v797_v24  ;;  %v1478_v23 = vld [vmem:[%s4611_s3 + $0x10] sm:$0xff] }
 0x341   :  { %3535 = vpow2.f32 %v820_v22 }
 0x342   :  { %v822_v36 = vmul.f32 1.442695, %v809_v35 }
 0x343   :  { %v803_v25 = vpop.xlane.xlu0 %802 }
 0x344   :  { %v811_v37 = vsub.f32 %v779_v58, %v803_v25  ;;  %3537 = vpow2.f32 %v822_v36 }
 0x346   :  { %v3532_v26 = vpop.eup %3531  ;;  %v826_v41 = vmul.f32 1.442695, %v811_v37 }
 0x347   :  { %v945_v29 = vpop.permute.xlu0 %944  ;;  %v837_v30 = vsel %vm163_vm2, %v3532_v26, 0.0 }
 0x348   :  { %3294 = vmatpush3.msra.mxu1 %v945_v29  ;;  %838 = vadd.xlane.f32.xlu0 %v837_v30  ;;  %v1479_v30 = vld [vmem:[%s4611_s3 + $0x18] sm:$0xff] }
 0x349   :  { %3303 = vmatprep.subr.mxu1 %v3631_v8 }
 0x34a   :  { %v3534_v13 = vpop.eup %3533 }
 0x34b   :  { %v834_v31 = vsel %vm163_vm2, %v3534_v13, 0.0  ;;  %v3886_v32 = vpop.eup %3535 }
 0x34c   :  { %835 = vadd.xlane.f32.xlu1 %v834_v31  ;;  %v840_v33 = vsel %vm163_vm2, %v3886_v32, 0.0 }
 0x34e   :  { %v3892_v43 = vpop.eup %3537 }
 0x350   :  { %841 = vadd.xlane.f32.xlu1 %v840_v33 }
 0x35e   :  { %1172 = vrot.lane.b32.xlu0 %v3769_v11, %s3637_s22  ;;  %v843_v11 = vsel %vm163_vm2, %v3892_v43, 0.0 }
 0x36c   :  { %v800_v38 = vpop.xlane.xlu1 %799 }
 0x36d   :  { %v810_v39 = vsub.f32 %v778_v63, %v800_v38  ;;  %v3046_v38 = vld [vmem:[%s4612_s4] ss:$0 sm:$0xff] }
 0x36f   :  { %v824_v40 = vmul.f32 1.442695, %v810_v39 }
 0x370   :  { %v1097_v50 = vpop.permute.xlu1 %1096 }
 0x371   :  { %3539 = vpow2.f32 %v824_v40 }
 0x372   :  { %3541 = vpow2.f32 %v826_v41 }
 0x378   :  { %v833_v42 = vpop.xlane.xlu0 %832 }
 0x379   :  { %3543 = vrcp.f32 %v833_v42 }
 0x37b   :  { %v3540_v44 = vpop.eup %3539 }
 0x37c   :  { %v846_v45 = vsel %vm163_vm2, %v3540_v44, 0.0  ;;  %v3897_v46 = vpop.eup %3541 }
 0x37d   :  { %847 = vadd.xlane.f32.xlu1 %v846_v45  ;;  %844 = vadd.xlane.f32.xlu0 %v843_v11  ;;  %v849_v47 = vsel %vm163_vm2, %v3897_v46, 0.0 }
 0x381   :  { %850 = vadd.xlane.f32.xlu0 %v849_v47 }
 0x383   :  { %v3544_v48 = vpop.eup %3543 }
 0x384   :  { %v861_v49 = vmul.f32 %v3544_v48, %v3528_v1 }
 0x386   :  { %3296 = vmatmul.mubr.msk.f32.vlgmr.msra.gmra.mrb[8].mxu1 %vm163_vm2, %v861_v49 }
 0x387   :  { %3304 = vmatpush3.msra.mxu1 %v1097_v50  ;;  %3305 = vmatprep.mubr.msk.f32.mxu1 %vm3634_vm1, %v3631_v8 }
 0x388   :  { %3313 = vmatprep.subr.mxu1 %v3631_v8 }
 0x38e   :  { %1400 = vrot.lane.b32.xlu1 %v3780_v15, %s3637_s22 }
 0x397   :  { %1324 = vrot.lane.b32.xlu0 %v3782_v16, %s3637_s22 }
 0x3a1   :  { %v830_v51 = vpop.xlane.xlu1 %829 }
 0x3a2   :  { %3545 = vrcp.f32 %v830_v51 }
 0x3a5   :  { %v1249_v54 = vpop.permute.xlu1 %1248 }
 0x3ac   :  { %v3546_v52 = vpop.eup %3545 }
 0x3ad   :  { %v860_v53 = vmul.f32 %v3546_v52, %v3877_v9 }
 0x3af   :  { %3291 = vmatmul.mubr.msk.f32.vlgmr.msra.gmra.mrb[10].mxu0 %vm163_vm2, %v860_v53 }
 0x3b0   :  { %3299 = vmatpush3.msra.mxu0 %v1021_v34  ;;  %3300 = vmatprep.mubr.msk.f32.mxu0 %vm3634_vm1, %v3631_v8 }
 0x3b1   :  { %3308 = vmatprep.subr.mxu0 %v3631_v8 }
 0x3d5   :  { %v839_v55 = vpop.xlane.xlu0 %838 }
 0x3d6   :  { %3547 = vrcp.f32 %v839_v55  ;;  %v2104_v55 = vld [vmem:[%s4617_s9 + $0x38] sm:$0xff] }
 0x3d9   :  { %v836_v15 = vpop.xlane.xlu1 %835  ;;  %v1173_v60 = vpop.permute.xlu0 %1172 }
 0x3da   :  { %3549 = vrcp.f32 %v836_v15 }
 0x3dd   :  { %v842_v56 = vpop.xlane.xlu1 %841 }
 0x3de   :  { %3551 = vrcp.f32 %v842_v56  ;;  %v2097_v56 = vld [vmem:[%s4617_s9] sm:$0xff] }
 0x3e0   :  { %v3548_v16 = vpop.eup %3547 }
 0x3e1   :  { %v863_v57 = vmul.f32 %v3548_v16, %v3532_v26  ;;  %v2103_v16 = vld [vmem:[%s4617_s9 + $0x30] sm:$0xff] }
 0x3e3   :  { %3306 = vmatmul.mubr.msk.f32.vlgmr.msra.gmra.mrb[10].mxu1 %vm163_vm2, %v863_v57  ;;  %v3382_v57 = vpack.c.bf16 %v2103_v16, %v2097_v56 }
 0x3e4   :  { %v3550_v58 = vpop.eup %3549  ;;  %3314 = vmatpush3.msra.mxu1 %v1249_v54  ;;  %3315 = vmatprep.mubr.msk.f32.mxu1 %vm3634_vm1, %v3631_v8  ;;  %v2098_v54 = vld [vmem:[%s4617_s9 + $0x8] sm:$0xff] }
 0x3e5   :  { %v862_v59 = vmul.f32 %v3550_v58, %v3534_v13  ;;  %3323 = vmatprep.subr.mxu1 %v3631_v8  ;;  %v3380_v15 = vpack.c.bf16 %v2104_v55, %v2098_v54  ;;  %v1866_v58 = vld [vmem:[%s4615_s7] sm:$0xff] }
 0x3e6   :  { %v3049_v55 = vld [vmem:[%s4616_s8] ss:$0 sm:$0xff]  ;;  %s3638_s8 = smov 124  }
 0x3e7   :  { %3301 = vmatmul.mubr.msk.f32.vlgmr.msra.gmra.mrb[12].mxu0 %vm163_vm2, %v862_v59  ;;  %v1867_v59 = vld [vmem:[%s4615_s7 + $0x8] sm:$0xff] }
 0x3e8   :  { %v3552_v61 = vpop.eup %3551  ;;  %3309 = vmatpush3.msra.mxu0 %v1173_v60  ;;  %3310 = vmatprep.mubr.msk.f32.mxu0 %vm3634_vm1, %v3631_v8  ;;  %v3372_v60 = vpack.c.bf16 %v1867_v59, %v1866_v58 }
 0x3e9   :  { %v864_v62 = vmul.f32 %v3552_v61, %v3886_v32  ;;  %3318 = vmatprep.subr.mxu0 %v3631_v8  ;;  %v2110_v61 = vld [vmem:[%s4617_s9 + $0x68] sm:$0xff] }
 0x3eb   :  { %3311 = vmatmul.mubr.msk.f32.vlgmr.msra.gmra.mrb[14].mxu0 %vm163_vm2, %v864_v62  ;;  %v2116_v62 = vld [vmem:[%s4617_s9 + $0x98] sm:$0xff] }
 0x3ec   :  { %3320 = vmatprep.mubr.msk.f32.mxu0 %vm3634_vm1, %v3631_v8 }
 0x40a   :  { %v848_v63 = vpop.xlane.xlu1 %847  ;;  %v845_v0 = vpop.xlane.xlu0 %844 }
 0x40b   :  { %3553 = vrcp.f32 %v848_v63  ;;  %v3384_v63 = vpack.c.bf16 %v2116_v62, %v2110_v61 }
 0x40c   :  { %3555 = vrcp.f32 %v845_v0  ;;  %v2109_v0 = vld [vmem:[%s4617_s9 + $0x60] sm:$0xff] }
 0x40e   :  { %v851_v1 = vpop.xlane.xlu0 %850  ;;  %v1401_v12 = vpop.permute.xlu1 %1400 }
 0x40f   :  { %3557 = vrcp.f32 %v851_v1  ;;  %v2115_v1 = vld [vmem:[%s4617_s9 + $0x90] sm:$0xff] }
 0x412   :  { %v1325_v3 = vpop.permute.xlu0 %1324 }
 0x413   :  { %3319 = vmatpush3.msra.mxu0 %v1325_v3  ;;  %v1868_v3 = vld [vmem:[%s4615_s7 + $0x10] sm:$0xff] }
 0x414   :  { %3328 = vmatprep.subr.mxu0 %v1476_v2 }
 0x415   :  { %v3554_v4 = vpop.eup %3553 }
 0x416   :  { %v3556_v6 = vpop.eup %3555  ;;  %v866_v9 = vmul.f32 %v3554_v4, %v3540_v44  ;;  %v1869_v4 = vld [vmem:[%s4615_s7 + $0x18] sm:$0xff] }
 0x417   :  { %v865_v10 = vmul.f32 %v3556_v6, %v3892_v43  ;;  %v3376_v6 = vpack.c.bf16 %v1869_v4, %v1868_v3 }
 0x418   :  { %3321 = vmatmul.mubr.msk.f32.vlgmr.msra.gmra.mrb[16].mxu0 %vm163_vm2, %v866_v9  ;;  %v2102_v9 = vld [vmem:[%s4617_s9 + $0x28] sm:$0xff] }
 0x419   :  { %3316 = vmatmul.mubr.msk.f32.vlgmr.msra.gmra.mrb[12].mxu1 %vm163_vm2, %v865_v10  ;;  %3329 = vmatpush3.msra.mxu0 %v1476_v2  ;;  %v3558_v17 = vpop.eup %3557  ;;  %v3386_v2 = vpack.c.bf16 %v2115_v1, %v2109_v0  ;;  %v2108_v10 = vld [vmem:[%s4617_s9 + $0x58] sm:$0xff] }
 0x41a   :  { %3324 = vmatpush3.msra.mxu1 %v1401_v12  ;;  %3325 = vmatprep.mubr.msk.f32.mxu1 %vm3634_vm1, %v3631_v8  ;;  %v867_v18 = vmul.f32 %v3558_v17, %v3897_v46  ;;  %v3396_v12 = vpack.c.bf16 %v2108_v10, %v2102_v9  ;;  %v2100_v17 = vld [vmem:[%s4617_s9 + $0x18] sm:$0xff] }
 0x41b   :  { %3333 = vmatprep.subr.mxu0 %v1477_v19  ;;  %3381 = vmatprep.subr.bf16.mxu1 %v3380_v15 }
 0x41d   :  { %3326 = vmatmul.mubr.msk.f32.vlgmr.msra.gmra.mrb[14].mxu1 %vm163_vm2, %v867_v18  ;;  %v2106_v18 = vld [vmem:[%s4617_s9 + $0x48] sm:$0xff] }
 0x41e   :  { %2217 = vmatprep.mubr.f32.mxu1 %v3631_v8  ;;  %3383 = vmatpush1.bf16.msra.mxu1 %v3382_v57 }
 0x41f   :  { %3385 = vmatprep.subr.bf16.mxu1 %v3384_v63 }
 0x422   :  { %3387 = vmatpush1.bf16.msra.mxu1 %v3386_v2 }
 0x423   :  { %3397 = vmatprep.subr.bf16.mxu1 %v3396_v12 }
 0x459   :  { %v1016_v20 = vpop.f32.mrb[8].mxu1 }
 0x45a   :  { %v3297_v21 = vpop.f32.mrb[9].mxu1 }
 0x482   :  { %v940_v14 = vpop.f32.mrb[10].mxu0 }
 0x483   :  { %v3292_v22 = vpop.f32.mrb[11].mxu0  ;;  %3330 = vmatprep.mubr.msk.f32.mxu0 %vm163_vm2, %v940_v14 }
 0x484   :  { %3331 = vmatmul.mubr.msk.f32.vlgmr.msra.gmra.mrb[18].mxu0 %vm163_vm2, %v1016_v20 }
 0x485   :  { %3334 = vmatpush3.msra.mxu0 %v1477_v19  ;;  %v3388_v19 = vpack.c.bf16 %v2106_v18, %v2100_v17 }
 0x486   :  { %3338 = vmatprep.subr.mxu0 %v1478_v23 }
 0x4b6   :  { %v1168_v24 = vpop.f32.mrb[10].mxu1 }
 0x4b7   :  { %v3307_v25 = vpop.f32.mrb[11].mxu1 }
 0x4ba   :  { %v1092_v26 = vpop.f32.mrb[12].mxu0 }
 0x4bb   :  { %v3302_v29 = vpop.f32.mrb[13].mxu0  ;;  %3335 = vmatprep.mubr.msk.f32.mxu0 %vm163_vm2, %v1092_v26  ;;  %v3047_v26 = vld [vmem:[%s4613_s5] ss:$0 sm:$0xff]  ;;  %s3001_s5 = sshll.u32 %s3643_s19, 4  ;;  %s3002_s5 = int_to_ptr.vmem [resolvable:$true] %s3001_s5 }
 0x4bc   :  { %3336 = vmatmul.mubr.msk.f32.vlgmr.msra.gmra.mrb[18].mxu0 %vm163_vm2, %v1168_v24  ;;  %p3612_p1 = scmp.lt.s32.totalorder %s3002_s5, %s3002_s5 }
 0x4bd   :  { %3339 = vmatpush3.msra.mxu0 %v1478_v23 }
 0x4be   :  { %v1244_v13 = vpop.f32.mrb[14].mxu0  ;;  %3343 = vmatprep.subr.mxu0 %v1479_v30 }
 0x4bf   :  { %v3312_v31 = vpop.f32.mrb[15].mxu0  ;;  %3340 = vmatprep.mubr.msk.f32.mxu0 %vm163_vm2, %v1244_v13 }
 0x4c0   :  { %v2101_v31 = vld [vmem:[%s4617_s9 + $0x20] sm:$0xff] }
 0x4eb   :  { %v1396_v32 = vpop.f32.mrb[16].mxu0 }
 0x4ec   :  { %v1320_v33 = vpop.f32.mrb[12].mxu1  ;;  %v3322_v34 = vpop.f32.mrb[17].mxu0 }
 0x4ed   :  { %v3317_v35 = vpop.f32.mrb[13].mxu1  ;;  %3341 = vmatmul.mubr.msk.f32.vlgmr.msra.gmra.mrb[18].mxu0 %vm163_vm2, %v1320_v33  ;;  %v2114_v34 = vld [vmem:[%s4617_s9 + $0x88] sm:$0xff] }
 0x4ee   :  { %3344 = vmatpush3.msra.mxu0 %v1479_v30  ;;  %3345 = vmatprep.mubr.msk.f32.mxu0 %vm163_vm2, %v1396_v32  ;;  %v3048_v30 = vld [vmem:[%s4614_s6] ss:$0 sm:$0xff]  ;;  %v2107_v32 = vld [vmem:[%s4617_s9 + $0x50] sm:$0xff]  ;;  %v2120_v35 = vld [vmem:[%s4617_s9 + $0xb8] sm:$0xff] }
 0x4ef   :  { %3373 = vmatprep.subr.bf16.mxu0 %v3372_v60 }
 0x4f0   :  { %v1472_v36 = vpop.f32.mrb[14].mxu1 }
 0x4f1   :  { %v3327_v37 = vpop.f32.mrb[15].mxu1 }
 0x4f5   :  { %3346 = vmatmul.mubr.msk.f32.vlgmr.msra.gmra.mrb[18].mxu0 %vm163_vm2, %v1472_v36 }
 0x4f6   :  { %3375 = vmatpush3.bf16.msra.mxu0 %v3372_v60 }
 0x4f7   :  { %3377 = vmatprep.subr.bf16.mxu0 %v3376_v6 }
 0x4fa   :  { %3379 = vmatpush3.bf16.msra.mxu0 %v3376_v6 }
 0x4fb   :  { %3389 = vmatprep.subr.bf16.mxu0 %v3388_v19 }
 0x5c8   :  { %v3347_v39 = vpop.f32.mrb[18].mxu0 }
 0x5c9   :  { %v1818_v40 = vadd.f32 %v3347_v39, %v3046_v38  ;;  %v1795_v41 = vpop.f32.mrb[19].mxu0  ;;  %v2099_v39 = vld [vmem:[%s4617_s9 + $0x10] sm:$0xff] }
 0x5ca   :  { %v1817_v42 = vadd.f32 %v3046_v38, %v1795_v41  ;;  %v3398_v38 = vpack.c.bf16 %v2107_v32, %v2101_v31 }
 0x5cb   :  { %v1824_v43 = vsel %vm60_vm0, %v1818_v40, 0.0 }
 0x5cc   :  { %1825 = vadd.xlane.f32.xlu1 %v1824_v43  ;;  %v1821_v44 = vsel %vm60_vm0, %v1817_v42, 0.0  ;;  %v3400_v43 = vpack.c.bf16 %v2120_v35, %v2114_v34 }
 0x5cd   :  { %1822 = vadd.xlane.f32.xlu0 %v1821_v44  ;;  %v2113_v44 = vld [vmem:[%s4617_s9 + $0x80] sm:$0xff] }
 0x659   :  { %v1826_v45 = vpop.xlane.xlu1 %1825 }
 0x65a   :  { %v1829_v11 = vmul.f32 0.03125, %v1826_v45  ;;  %v1823_v46 = vpop.xlane.xlu0 %1822  ;;  %v2119_v45 = vld [vmem:[%s4617_s9 + $0xb0] sm:$0xff] }
 0x65b   :  { %v1828_v47 = vmul.f32 0.03125, %v1823_v46 }
 0x65c   :  { %v1831_v48 = vsub.f32 %v1818_v40, %v1829_v11  ;;  %v2112_v11 = vld [vmem:[%s4617_s9 + $0x78] sm:$0xff] }
 0x65d   :  { %v1830_v49 = vsub.f32 %v1817_v42, %v1828_v47  ;;  %v2105_v42 = vld [vmem:[%s4617_s9 + $0x40] sm:$0xff] }
 0x65e   :  { %v1833_v52 = vmul.f32 %v1831_v48, %v1831_v48  ;;  %v3390_v47 = vpack.c.bf16 %v2105_v42, %v2099_v39 }
 0x65f   :  { %v1832_v50 = vmul.f32 %v1830_v49, %v1830_v49 }
 0x660   :  { %v1837_v53 = vsel %vm60_vm0, %v1833_v52, 0.0  ;;  %v2117_v52 = vld [vmem:[%s4617_s9 + $0xa0] sm:$0xff] }
 0x661   :  { %v1834_v51 = vsel %vm60_vm0, %v1832_v50, 0.0 }
 0x662   :  { %1835 = vadd.xlane.f32.xlu0 %v1834_v51  ;;  %v2111_v51 = vld [vmem:[%s4617_s9 + $0x70] sm:$0xff] }
 0x666   :  { %1838 = vadd.xlane.f32.xlu0 %v1837_v53 }
 0x6ef   :  { %v1836_v20 = vpop.xlane.xlu0 %1835 }
 0x6f0   :  { %v1840_v21 = vmul.f32 0.03125, %v1836_v20 }
 0x6f2   :  { %v1842_v14 = vadd.f32 1e-05, %v1840_v21 }
 0x6f3   :  { %v1839_v22 = vpop.xlane.xlu0 %1838 }
 0x6f4   :  { %3559 = vrsqrt.f32 %v1842_v14  ;;  %v1841_v23 = vmul.f32 0.03125, %v1839_v22 }
 0x6f6   :  { %v1843_v24 = vadd.f32 1e-05, %v1841_v23 }
 0x6f8   :  { %3561 = vrsqrt.f32 %v1843_v24 }
 0x6fe   :  { %v3560_v25 = vpop.eup %3559 }
 0x6ff   :  { %v1846_v29 = vmul.f32 %v3560_v25, %v1830_v49 }
 0x701   :  { %v1854_v13 = vmul.f32 %v3047_v26, %v1846_v29 }
 0x702   :  { %v3562_v33 = vpop.eup %3561 }
 0x703   :  { %v1847_v36 = vmul.f32 %v3562_v33, %v1831_v48  ;;  %v1862_v37 = vadd.f32 %v3048_v30, %v1854_v13  ;;  %v3402_v48 = vpack.c.bf16 %v2119_v45, %v2113_v44  ;;  %v1958_v13 = vld [vmem:[%s4609_s1] sm:$0xff] }
 0x705   :  { %v1855_v40 = vmul.f32 %v3047_v26, %v1847_v36  ;;  %v4031_v41 = vadd.f32 %v1862_v37, %v3746_v5  ;;  %v2118_v5 = vld [vmem:[%s4617_s9 + $0xa8] sm:$0xff] }
 0x706   :  { %v3392_v50 = vpack.c.bf16 %v2118_v5, %v2112_v11 }
 0x707   :  { %3356 = vmatprep.mubr.msk.f32.mxu0 %vm60_vm0, %v4031_v41  ;;  %3052 = vmatmul.mubr.msk.f32.vlgmr.msra.gmra.mrb[16].mxu1 %vm60_vm0, %v4031_v41  ;;  %v1863_v46 = vadd.f32 %v3048_v30, %v1855_v40  ;;  %v1959_v30 = vld [vmem:[%s4609_s1 + $0x8] sm:$0xff] }
 0x708   :  { %3399 = vmatpush1.bf16.msra.mxu1 %v3398_v38  ;;  %2223 = vmatprep.mubr.f32.mxu1 %v3631_v8 }
 0x709   :  { %v4054_v49 = vadd.f32 %v1863_v46, %v3753_v7  ;;  %3401 = vmatprep.subr.bf16.mxu1 %v3400_v43  ;;  %v3394_v7 = vpack.c.bf16 %v2117_v52, %v2111_v51 }
 0x70b   :  { %3357 = vmatmul.mubr.msk.f32.vlgmr.msra.gmra.mrb[20].mxu0 %vm60_vm0, %v4054_v49  ;;  %3053 = vmatmul.mubr.msk.f32.gmra.mrb[18].mxu1 %vm60_vm0, %v4054_v49 }
 0x70c   :  { %3391 = vmatpush1.bf16.msra.mxu0 %v3390_v47  ;;  %3403 = vmatpush1.bf16.msra.mxu1 %v3402_v48 }
 0x70d   :  { %3393 = vmatprep.subr.bf16.mxu0 %v3392_v50  ;;  %2371 = vmatprep.mubr.f32.mxu1 %v3631_v8 }
 0x70e   :  { %2294 = vmatprep.mubr.f32.mxu0 %v3631_v8 }
 0x70f   :  { %3056 = vmatmul.mubr.msk.f32.vlgmr.msra.gmra.mrb[20].mxu1 %vm60_vm0, %v4031_v41 }
 0x710   :  { %3395 = vmatpush1.bf16.msra.mxu0 %v3394_v7  ;;  %2377 = vmatprep.mubr.f32.mxu1 %v3631_v8 }
 0x713   :  { %3054 = vmatmul.mubr.msk.f32.vlgmr.msra.gmra.mrb[22].mxu0 %vm60_vm0, %v4031_v41  ;;  %3057 = vmatmul.mubr.msk.f32.gmra.mrb[22].mxu1 %vm60_vm0, %v4054_v49 }
 0x714   :  { %2300 = vmatprep.mubr.f32.mxu0 %v3631_v8 }
 0x717   :  { %3055 = vmatmul.mubr.msk.f32.gmra.mrb[24].mxu0 %vm60_vm0, %v4054_v49 }
 0x7da   :  { %v4078_v53 = vpop.f32.mrb[16].mxu1 }
 0x7db   :  { %v4080_v54 = vpop.f32.mrb[17].mxu1 }
 0x7de   :  { %v3358_v15 = vpop.f32.mrb[20].mxu0  ;;  %v4085_v56 = vpop.f32.mrb[18].mxu1 }
 0x7df   :  { %v1955_v16 = vadd.f32 %v3358_v15, %v3049_v55  ;;  %v1949_v57 = vpop.f32.mrb[21].mxu0  ;;  %v4087_v58 = vpop.f32.mrb[19].mxu1 }
 0x7e0   :  { %v1950_v59 = vadd.f32 %v3049_v55, %v1949_v57 }
 0x7e1   :  { %v1963_v8 = vand.u32 2147483647, %v1955_v16  ;;  %v1961_v22 = vmax.f32 %v1955_v16, 0.0 }
 0x7e2   :  { %v1962_v60 = vand.u32 2147483647, %v1950_v59  ;;  %v4089_v61 = vpop.f32.mrb[20].mxu1  ;;  %v1960_v24 = vmax.f32 %v1950_v59, 0.0 }
 0x7e3   :  { %v1965_v62 = vsub.f32 0.0, %v1963_v8  ;;  %v4091_v63 = vpop.f32.mrb[21].mxu1 }
 0x7e4   :  { %v1964_v0 = vsub.f32 0.0, %v1962_v60 }
 0x7e5   :  { %v1968_v1 = vmul.f32 1.442695, %v1965_v62 }
 0x7e6   :  { %v1966_v2 = vmul.f32 1.442695, %v1964_v0  ;;  %v4093_v3 = vpop.f32.mrb[22].mxu0  ;;  %v4095_v4 = vpop.f32.mrb[22].mxu1 }
 0x7e7   :  { %3563 = vpow2.f32 %v1968_v1  ;;  %v4097_v6 = vpop.f32.mrb[23].mxu0  ;;  %v4099_v9 = vpop.f32.mrb[23].mxu1 }
 0x7e8   :  { %3565 = vpow2.f32 %v1966_v2 }
 0x7ea   :  { %v4101_v10 = vpop.f32.mrb[24].mxu0 }
 0x7eb   :  { %v4103_v12 = vpop.f32.mrb[25].mxu0 }
 0x7f1   :  { %v3564_v17 = vpop.eup %3563 }
 0x7f2   :  { %v3566_v18 = vpop.eup %3565  ;;  %v1971_v19 = vadd.f32 1.0, %v3564_v17 }
 0x7f3   :  { %v1970_v20 = vadd.f32 1.0, %v3566_v18 }
 0x7f4   :  { %3567 = vlog2.f32 %v1971_v19 }
 0x7f5   :  { %3569 = vlog2.f32 %v1970_v20 }
 0x7fe   :  { %v3568_v21 = vpop.eup %3567 }
 0x7ff   :  { %v3570_v14 = vpop.eup %3569  ;;  %v1975_v23 = vmul.f32 0.6931472, %v3568_v21 }
 0x800   :  { %v1973_v25 = vmul.f32 0.6931472, %v3570_v14 }
 0x801   :  { %v1977_v26 = vadd.f32 %v1975_v23, %v1961_v22 }
 0x802   :  { %v1976_v29 = vadd.f32 %v1973_v25, %v1960_v24 }
 0x803   :  { %1982 = vrot.lane.b32.xlu0 %v1977_v26, %s3638_s8 }
 0x804   :  { %1980 = vrot.lane.b32.xlu1 %v1976_v29, %s3638_s8 }
 0x875   :  { %v1983_v31 = vpop.permute.xlu0 %1982 }
 0x876   :  { %v1987_v32 = vmul.f32 %v1983_v31, %v1959_v30  ;;  %v1981_v33 = vpop.permute.xlu1 %1980 }
 0x877   :  { %v1986_v34 = vmul.f32 %v1981_v33, %v1958_v13 }
 0x878   :  { %v4111_v35 = vadd.f32 %v1987_v32, %v1955_v16 }
 0x879   :  { %v4113_v36 = vadd.f32 %v1986_v34, %v1950_v59 }
 0x87a   :  { %v1994_v37 = vsel %vm1990_vm4, %v4111_v35, -inf }
 0x87b   :  { %1995 = vmax.xlane.f32.xlu0 %v1994_v37  ;;  %v1991_v38 = vsel %vm1990_vm4, %v4113_v36, -inf }
 0x87c   :  { %1992 = vmax.xlane.f32.xlu1 %v1991_v38 }
 0x908   :  { %v4119_v39 = vpop.xlane.xlu0 %1995 }
 0x909   :  { %vm1998_vm5 = vcmp.eq.f32.partialorder %v4111_v35, %v4119_v39  ;;  %v4123_v40 = vpop.xlane.xlu1 %1992 }
 0x90a   :  { %v2000_v42 = vsel %vm1998_vm5, %v3838_v28, 4  ;;  %vm1997_vm6 = vcmp.eq.f32.partialorder %v4113_v36, %v4123_v40  ;;  %vm2635_vm5 = vcmask 1043456  }
 0x90b   :  { %v1999_v43 = vsel %vm1997_vm6, %v3838_v28, 4  ;;  %v2016_v44 = vsel %vm1990_vm4, %v2000_v42, 2147483647 }
 0x90c   :  { %v2018_v45 = vshra.s32 %v2016_v44, 16  ;;  %v2001_v11 = vsel %vm1990_vm4, %v1999_v43, 2147483647  ;;  %v2017_v48 = vand.u32 65535, %v2016_v44 }
 0x90d   :  { %v2003_v5 = vshra.s32 %v2001_v11, 16  ;;  %v2002_v50 = vand.u32 65535, %v2001_v11  ;;  %v2080_v11 = vsub.f32 %v4111_v35, %v4119_v39 }
 0x90e   :  { %v2020_v46 = vcvt.s32.f32 %v2018_v45  ;;  %v2019_v52 = vcvt.s32.f32 %v2017_v48 }
 0x90f   :  { %v2005_v47 = vcvt.s32.f32 %v2003_v5  ;;  %v2004_v55 = vcvt.s32.f32 %v2002_v50  ;;  %v2079_v5 = vsub.f32 %v4113_v36, %v4123_v40 }
 0x910   :  { %2021 = vmin.xlane.f32.xlu0 %v2020_v46 }
 0x911   :  { %2006 = vmin.xlane.f32.xlu1 %v2005_v47 }
 0x99d   :  { %v2022_v51 = vpop.xlane.xlu0 %2021 }
 0x99e   :  { %v2007_v7 = vpop.xlane.xlu1 %2006  ;;  %vm2023_vm7 = vcmp.eq.f32.partialorder %v2020_v46, %v2022_v51  ;;  %v2028_v57 = vcvt.f32.s32 %v2022_v51  ;;  %v2083_v46 = vmul.f32 1.442695, %v2080_v11  ;;  %v2558_v11 = vld [vmem:[%s4619_s11 + $0xc0] sm:$0xff] }
 0x99f   :  { %v2024_v15 = vsel %vm2023_vm7, %v2019_v52, inf  ;;  %vm2008_vm8 = vcmp.eq.f32.partialorder %v2005_v47, %v2007_v7  ;;  %v2013_v59 = vcvt.f32.s32 %v2007_v7  ;;  %v2081_v47 = vmul.f32 1.442695, %v2079_v5  ;;  %v2559_v5 = vld [vmem:[%s4619_s11 + $0xc8] sm:$0xff] }
 0x9a0   :  { %2025 = vmin.xlane.f32.xlu0 %v2024_v15  ;;  %v2009_v16 = vsel %vm2008_vm8, %v2004_v55, inf  ;;  %v2029_v60 = vshll.u32 %v2028_v57, 16  ;;  %3571 = vpow2.f32 %v2083_v46 }
 0x9a1   :  { %2010 = vmin.xlane.f32.xlu1 %v2009_v16  ;;  %v2014_v1 = vshll.u32 %v2013_v59, 16  ;;  %3573 = vpow2.f32 %v2081_v47  ;;  %v3420_v47 = vpack.c.bf16 %v2559_v5, %v2558_v11  ;;  %v2588_v11 = vld [vmem:[%s4619_s11 + $0x1b0] sm:$0xff]  ;;  %v2589_v5 = vld [vmem:[%s4619_s11 + $0x1b8] sm:$0xff] }
 0xa2d   :  { %v2026_v8 = vpop.xlane.xlu0 %2025 }
 0xa2e   :  { %v2027_v62 = vcvt.f32.s32 %v2026_v8  ;;  %v2011_v0 = vpop.xlane.xlu1 %2010 }
 0xa2f   :  { %v2012_v2 = vcvt.f32.s32 %v2011_v0  ;;  %v3639_v0 = vmov 1  }
 0xa30   :  { %v2030_v17 = vadd.s32 %v2029_v60, %v2027_v62  ;;  %v2630_v62 = vld [vmem:[%s4620_s12] sm:$0xf]  ;;  %3521 = vset.pattern.permute.xlu1 %v3639_v0  ;;  %v2565_v0 = vld [vmem:[%s4619_s11 + $0xf8] sm:$0xff] }
 0xa31   :  { %v2015_v18 = vadd.s32 %v2014_v1, %v2012_v2  ;;  %v3640_v1 = vmov 0   ;;  %3359 = vmatprep.subr.msk.mxu0 %vm2635_vm5, %v2630_v62  ;;  %v2551_v2 = vld [vmem:[%s4619_s11 + $0x88] sm:$0xff] }
 0xa32   :  { %vm2032_vm9 = vcmp.eq.s32.totalorder %v3838_v28, %v2030_v17  ;;  %3522 = vset.pattern.permute.xlu0 %v3640_v1  ;;  %3360 = vmatpush3.msk.msra.mxu0 %vm2635_vm5, %v2630_v62  ;;  %v2534_v17 = vld [vmem:[%s4619_s11] sm:$0xff]  ;;  %v2564_v62 = vld [vmem:[%s4619_s11 + $0xf0] sm:$0xff] }
 0xa33   :  { %v2034_v19 = vsel %vm2032_vm9, -inf, %v4111_v35  ;;  %vm2031_vm10 = vcmp.eq.s32.totalorder %v3838_v28, %v2015_v18  ;;  %v3572_v35 = vpop.eup %3571 }
 0xa34   :  { %v2038_v20 = vsel %vm1990_vm4, %v2034_v19, -inf  ;;  %v2033_v21 = vsel %vm2031_vm10, -inf, %v4113_v36  ;;  %v3574_v36 = vpop.eup %3573 }
 0xa35   :  { %2039 = vmax.xlane.f32.xlu0 %v2038_v20  ;;  %v2035_v14 = vsel %vm1990_vm4, %v2033_v21, -inf  ;;  %v2552_v20 = vld [vmem:[%s4619_s11 + $0x90] sm:$0xff] }
 0xa36   :  { %2036 = vmax.xlane.f32.xlu1 %v2035_v14 }
 0xac2   :  { %v2040_v22 = vpop.xlane.xlu0 %2039 }
 0xac3   :  { %vm2042_vm11 = vcmp.eq.f32.partialorder %v2034_v19, %v2040_v22  ;;  %v2037_v23 = vpop.xlane.xlu1 %2036  ;;  %v2535_v19 = vld [vmem:[%s4619_s11 + $0x8] sm:$0xff] }
 0xac4   :  { %v2044_v24 = vsel %vm2042_vm11, %v3838_v28, 4  ;;  %vm2041_vm12 = vcmp.eq.f32.partialorder %v2033_v21, %v2037_v23  ;;  %v2553_v21 = vld [vmem:[%s4619_s11 + $0x98] sm:$0xff]  ;;  %v3406_v14 = vpack.c.bf16 %v2535_v19, %v2534_v17  ;;  %v2536_v23 = vld [vmem:[%s4619_s11 + $0x10] sm:$0xff] }
 0xac5   :  { %v2060_v25 = vsel %vm1990_vm4, %v2044_v24, 2147483647  ;;  %v2043_v26 = vsel %vm2041_vm12, %v3838_v28, 4  ;;  %v3408_v22 = vpack.c.bf16 %v2553_v21, %v2552_v20  ;;  %v2537_v24 = vld [vmem:[%s4619_s11 + $0x18] sm:$0xff]  ;;  %v2548_v17 = vld [vmem:[%s4619_s11 + $0x70] sm:$0xff] }
 0xac6   :  { %v2045_v29 = vsel %vm1990_vm4, %v2043_v26, 2147483647  ;;  %v2062_v30 = vshra.s32 %v2060_v25, 16  ;;  %v2061_v33 = vand.u32 65535, %v2060_v25  ;;  %v2554_v25 = vld [vmem:[%s4619_s11 + $0xa0] sm:$0xff]  ;;  %v2555_v26 = vld [vmem:[%s4619_s11 + $0xa8] sm:$0xff] }
 0xac7   :  { %v2047_v13 = vshra.s32 %v2045_v29, 16  ;;  %v2046_v34 = vand.u32 65535, %v2045_v29  ;;  %v3410_v29 = vpack.c.bf16 %v2537_v24, %v2536_v23  ;;  %v2567_v23 = vld [vmem:[%s4619_s11 + $0x108] sm:$0xff] }
 0xac8   :  { %v2064_v31 = vcvt.s32.f32 %v2062_v30  ;;  %v2063_v38 = vcvt.s32.f32 %v2061_v33  ;;  %v3412_v30 = vpack.c.bf16 %v2555_v26, %v2554_v25  ;;  %v2557_v33 = vld [vmem:[%s4619_s11 + $0xb8] sm:$0xff]  ;;  %v2584_v25 = vld [vmem:[%s4619_s11 + $0x190] sm:$0xff] }
 0xac9   :  { %v2049_v32 = vcvt.s32.f32 %v2047_v13  ;;  %v2048_v43 = vcvt.s32.f32 %v2046_v34  ;;  %v2538_v13 = vld [vmem:[%s4619_s11 + $0x20] sm:$0xff]  ;;  %v2585_v26 = vld [vmem:[%s4619_s11 + $0x198] sm:$0xff] }
 0xaca   :  { %2065 = vmin.xlane.f32.xlu0 %v2064_v31 }
 0xacb   :  { %2050 = vmin.xlane.f32.xlu1 %v2049_v32 }
 0xb57   :  { %v2066_v37 = vpop.xlane.xlu0 %2065 }
 0xb58   :  { %v2051_v42 = vpop.xlane.xlu1 %2050  ;;  %vm2067_vm13 = vcmp.eq.f32.partialorder %v2064_v31, %v2066_v37  ;;  %v2072_v48 = vcvt.f32.s32 %v2066_v37  ;;  %v2539_v31 = vld [vmem:[%s4619_s11 + $0x28] sm:$0xff]  ;;  %v2582_v37 = vld [vmem:[%s4619_s11 + $0x180] sm:$0xff] }
 0xb59   :  { %v2068_v44 = vsel %vm2067_vm13, %v2063_v38, inf  ;;  %vm2052_vm14 = vcmp.eq.f32.partialorder %v2049_v32, %v2051_v42  ;;  %v2057_v50 = vcvt.f32.s32 %v2051_v42  ;;  %v2556_v32 = vld [vmem:[%s4619_s11 + $0xb0] sm:$0xff]  ;;  %v3414_v34 = vpack.c.bf16 %v2539_v31, %v2538_v13  ;;  %v2583_v38 = vld [vmem:[%s4619_s11 + $0x188] sm:$0xff] }
 0xb5a   :  { %2069 = vmin.xlane.f32.xlu0 %v2068_v44  ;;  %v2053_v45 = vsel %vm2052_vm14, %v2048_v43, inf  ;;  %v2073_v52 = vshll.u32 %v2072_v48, 16  ;;  %v3416_v42 = vpack.c.bf16 %v2557_v33, %v2556_v32  ;;  %v2540_v43 = vld [vmem:[%s4619_s11 + $0x30] sm:$0xff]  ;;  %v2541_v44 = vld [vmem:[%s4619_s11 + $0x38] sm:$0xff]  ;;  %v2542_v48 = vld [vmem:[%s4619_s11 + $0x40] sm:$0xff]  ;;  %v3440_v31 = vpack.c.bf16 %v2585_v26, %v2584_v25 }
 0xb5b   :  { %2054 = vmin.xlane.f32.xlu1 %v2053_v45  ;;  %v2058_v15 = vshll.u32 %v2057_v50, 16  ;;  %v3436_v45 = vpack.c.bf16 %v2583_v38, %v2582_v37  ;;  %v3418_v46 = vpack.c.bf16 %v2541_v44, %v2540_v43  ;;  %v2543_v50 = vld [vmem:[%s4619_s11 + $0x48] sm:$0xff]  ;;  %v2568_v32 = vld [vmem:[%s4619_s11 + $0x110] sm:$0xff]  ;;  %v2569_v33 = vld [vmem:[%s4619_s11 + $0x118] sm:$0xff]  ;;  %v2125_v26 = vsub.s32 0, %v3836_v27 }
 0xb5c   :  { %v3442_v37 = vpack.c.bf16 %v2569_v33, %v2568_v32  ;;  %v2615_v38 = vld [vmem:[%s4619_s11 + $0x288] sm:$0xff]  ;;  %v2570_v43 = vld [vmem:[%s4619_s11 + $0x120] sm:$0xff] }
 0xb5d   :  { %3437 = vmatprep.subr.bf16.mxu0 %v3436_v45  ;;  %v2571_v44 = vld [vmem:[%s4619_s11 + $0x128] sm:$0xff] }
 0xbe7   :  { %v2070_v51 = vpop.xlane.xlu0 %2069 }
 0xbe8   :  { %v2071_v7 = vcvt.f32.s32 %v2070_v51  ;;  %v2055_v55 = vpop.xlane.xlu1 %2054  ;;  %v2560_v51 = vld [vmem:[%s4619_s11 + $0xd0] sm:$0xff] }
 0xbe9   :  { %v2056_v16 = vcvt.f32.s32 %v2055_v55 }
 0xbea   :  { %v2074_v57 = vadd.s32 %v2073_v52, %v2071_v7  ;;  %v2561_v52 = vld [vmem:[%s4619_s11 + $0xd8] sm:$0xff]  ;;  %v3422_v7 = vpack.c.bf16 %v2543_v50, %v2542_v48  ;;  %v3448_v48 = vpack.c.bf16 %v2589_v5, %v2588_v11  ;;  %v2572_v50 = vld [vmem:[%s4619_s11 + $0x130] sm:$0xff] }
 0xbeb   :  { %v2059_v59 = vadd.s32 %v2058_v15, %v2056_v16  ;;  %v3424_v55 = vpack.c.bf16 %v2561_v52, %v2560_v51  ;;  %v2544_v15 = vld [vmem:[%s4619_s11 + $0x50] sm:$0xff]  ;;  %v2545_v16 = vld [vmem:[%s4619_s11 + $0x58] sm:$0xff]  ;;  %v2590_v52 = vld [vmem:[%s4619_s11 + $0x1c0] sm:$0xff] }
 0xbec   :  { %vm2076_vm15 = vcmp.eq.s32.totalorder %v3838_v28, %v2074_v57  ;;  %v2562_v57 = vld [vmem:[%s4619_s11 + $0xe0] sm:$0xff]  ;;  %v2573_v51 = vld [vmem:[%s4619_s11 + $0x138] sm:$0xff] }
 0xbed   :  { %vm2078_vm1 = vmor %vm2032_vm9, %vm2076_vm15  ;;  %vm2075_vm2 = vcmp.eq.s32.totalorder %v3838_v28, %v2059_v59  ;;  %v2550_v28 = vld [vmem:[%s4619_s11 + $0x80] sm:$0xff]  ;;  %v2563_v59 = vld [vmem:[%s4619_s11 + $0xe8] sm:$0xff] }
 0xbee   :  { %v4153_v39 = vsel %vm2078_vm1, %v3572_v35, 0.0  ;;  %vm2077_vm3 = vmor %vm2031_vm10, %vm2075_vm2  ;;  %v3404_v18 = vpack.c.bf16 %v2551_v2, %v2550_v28  ;;  %v3426_v35 = vpack.c.bf16 %v2545_v16, %v2544_v15  ;;  %v3432_v2 = vpack.c.bf16 %v2565_v0, %v2564_v62  ;;  %v2574_v15 = vld [vmem:[%s4619_s11 + $0x140] sm:$0xff]  ;;  %v2575_v16 = vld [vmem:[%s4619_s11 + $0x148] sm:$0xff] }
 0xbef   :  { %v2090_v40 = vsel %vm1990_vm4, %v4153_v39, 0.0  ;;  %v4159_v8 = vsel %vm2077_vm3, %v3574_v36, 0.0  ;;  %v3428_v36 = vpack.c.bf16 %v2563_v59, %v2562_v57  ;;  %v2592_v57 = vld [vmem:[%s4619_s11 + $0x1d0] sm:$0xff]  ;;  %v2593_v59 = vld [vmem:[%s4619_s11 + $0x1d8] sm:$0xff]  ;;  %v2594_v62 = vld [vmem:[%s4619_s11 + $0x1e0] sm:$0xff] }
 0xbf0   :  { %2091 = vadd.xlane.f32.xlu0 %v2090_v40  ;;  %v2087_v60 = vsel %vm1990_vm4, %v4159_v8, 0.0  ;;  %3405 = vmatprep.subr.bf16.mxu1 %v3404_v18  ;;  %v2546_v40 = vld [vmem:[%s4619_s11 + $0x60] sm:$0xff]  ;;  %v2549_v18 = vld [vmem:[%s4619_s11 + $0x78] sm:$0xff]  ;;  %v2595_v0 = vld [vmem:[%s4619_s11 + $0x1e8] sm:$0xff] }
 0xbf1   :  { %2088 = vadd.xlane.f32.xlu1 %v2087_v60  ;;  %3407 = vmatpush3.bf16.msra.mxu1 %v3406_v14  ;;  %v2547_v60 = vld [vmem:[%s4619_s11 + $0x68] sm:$0xff]  ;;  %v3434_v19 = vpack.c.bf16 %v2549_v18, %v2548_v17  ;;  %v2578_v17 = vld [vmem:[%s4619_s11 + $0x160] sm:$0xff] }
 0xbf2   :  { %3409 = vmatprep.subr.bf16.mxu1 %v3408_v22  ;;  %v3430_v28 = vpack.c.bf16 %v2547_v60, %v2546_v40  ;;  %v2566_v22 = vld [vmem:[%s4619_s11 + $0x100] sm:$0xff]  ;;  %v2576_v40 = vld [vmem:[%s4619_s11 + $0x150] sm:$0xff]  ;;  %v2577_v60 = vld [vmem:[%s4619_s11 + $0x158] sm:$0xff] }
 0xbf3   :  { %v2579_v18 = vld [vmem:[%s4619_s11 + $0x168] sm:$0xff] }
 0xbf5   :  { %3411 = vmatpush3.bf16.msra.mxu1 %v3410_v29 }
 0xbf6   :  { %3413 = vmatprep.subr.bf16.mxu1 %v3412_v30  ;;  %v3438_v30 = vpack.c.bf16 %v2567_v23, %v2566_v22  ;;  %v2580_v23 = vld [vmem:[%s4619_s11 + $0x170] sm:$0xff] }
 0xbf9   :  { %3415 = vmatpush3.bf16.msra.mxu1 %v3414_v34  ;;  %v2614_v34 = vld [vmem:[%s4619_s11 + $0x280] sm:$0xff] }
 0xbfa   :  { %3417 = vmatprep.subr.bf16.mxu1 %v3416_v42  ;;  %v3468_v45 = vpack.c.bf16 %v2615_v38, %v2614_v34 }
 0xbfd   :  { %3419 = vmatpush3.bf16.msra.mxu1 %v3418_v46  ;;  %v3641_v46 = vmov 3  }
 0xbfe   :  { %3421 = vmatprep.subr.bf16.mxu1 %v3420_v47  ;;  %v3446_v47 = vpack.c.bf16 %v2571_v44, %v2570_v43 }
 0xc01   :  { %3423 = vmatpush3.bf16.msra.mxu1 %v3422_v7  ;;  %v3450_v7 = vpack.c.bf16 %v2573_v51, %v2572_v50 }
 0xc02   :  { %3425 = vmatprep.subr.bf16.mxu1 %v3424_v55 }
 0xc05   :  { %3427 = vmatpush3.bf16.msra.mxu1 %v3426_v35  ;;  %v3454_v35 = vpack.c.bf16 %v2575_v16, %v2574_v15 }
 0xc06   :  { %3429 = vmatprep.subr.bf16.mxu1 %v3428_v36  ;;  %v3456_v36 = vpack.c.bf16 %v2593_v59, %v2592_v57 }
 0xc09   :  { %3431 = vmatpush3.bf16.msra.mxu1 %v3430_v28  ;;  %v3458_v28 = vpack.c.bf16 %v2577_v60, %v2576_v40 }
 0xc0a   :  { %3433 = vmatprep.subr.bf16.mxu1 %v3432_v2  ;;  %v3460_v2 = vpack.c.bf16 %v2595_v0, %v2594_v62  ;;  %v2141_v0 = vsub.s32 4, %v3836_v27 }
 0xc0d   :  { %3435 = vmatpush3.bf16.msra.mxu1 %v3434_v19  ;;  %v2596_v19 = vld [vmem:[%s4619_s11 + $0x1f0] sm:$0xff] }
 0xc0e   :  { %3469 = vmatprep.subr.bf16.mxu1 %v3468_v45 }
 0xc7d   :  { %v2092_v20 = vpop.xlane.xlu0 %2091 }
 0xc7e   :  { %3575 = vrcp.f32 %v2092_v20  ;;  %v2089_v21 = vpop.xlane.xlu1 %2088  ;;  %v2597_v20 = vld [vmem:[%s4619_s11 + $0x1f8] sm:$0xff] }
 0xc7f   :  { %3577 = vrcp.f32 %v2089_v21  ;;  %v3642_v21 = vmov 2   ;;  %v3464_v22 = vpack.c.bf16 %v2597_v20, %v2596_v19 }
 0xc88   :  { %v3576_v14 = vpop.eup %3575 }
 0xc89   :  { %v3578_v24 = vpop.eup %3577  ;;  %v4285_v13 = vmul.f32 %v3576_v14, %v4153_v39  ;;  %v2586_v39 = vld [vmem:[%s4619_s11 + $0x1a0] sm:$0xff]  ;;  %v3462_v14 = vpack.c.bf16 %v2579_v18, %v2578_v17 }
 0xc8a   :  { %v4282_v29 = vmul.f32 %v3578_v24, %v4159_v8  ;;  %v2587_v8 = vld [vmem:[%s4619_s11 + $0x1a8] sm:$0xff]  ;;  %v2581_v24 = vld [vmem:[%s4619_s11 + $0x178] sm:$0xff] }
 0xc8b   :  { %v3444_v42 = vpack.c.bf16 %v2587_v8, %v2586_v39  ;;  %v3466_v25 = vpack.c.bf16 %v2581_v24, %v2580_v23 }
 0xc8c   :  { %2494 = vperm.xlu0 %3522, %v4282_v29   ;;  %2503 = vperm.xlu1 %3521, %v4282_v29  }
 0xc8d   :  { %3361 = vmatprep.mubr.msk.f32.mxu0 %vm1990_vm4, %v4282_v29 }
 0xc8e   :  { %3362 = vmatmul.mubr.msk.f32.vlgmr.msra.gmra.mrb[26].mxu0 %vm1990_vm4, %v4285_v13 }
 0xc8f   :  { %3439 = vmatpush3.bf16.msra.mxu0 %v3438_v30  ;;  %v2129_v30 = vsub.s32 1, %v3836_v27 }
 0xc90   :  { %2507 = vperm.xlu1 %3521, %v4285_v13   ;;  %3441 = vmatprep.subr.bf16.mxu0 %v3440_v31 }
 0xc91   :  { %3526 = vset.pattern.permute.xlu0 %v3641_v46 }
 0xc93   :  { %3443 = vmatpush3.bf16.msra.mxu0 %v3442_v37  ;;  %v2145_v37 = vsub.s32 5, %v3836_v27 }
 0xc94   :  { %3523 = vset.pattern.permute.xlu1 %v3640_v1  ;;  %3445 = vmatprep.subr.bf16.mxu0 %v3444_v42  ;;  %v2591_v1 = vld [vmem:[%s4619_s11 + $0x1c8] sm:$0xff] }
 0xc95   :  { %2499 = vperm.xlu1 %3523, %v4285_v13   ;;  %v3452_v55 = vpack.c.bf16 %v2591_v1, %v2590_v52 }
 0xc97   :  { %3447 = vmatpush3.bf16.msra.mxu0 %v3446_v47 }
 0xc98   :  { %3449 = vmatprep.subr.bf16.mxu0 %v3448_v48  ;;  %v2133_v48 = vsub.s32 2, %v3836_v27 }
 0xc99   :  { %3524 = vset.pattern.permute.xlu1 %v3641_v46 }
 0xc9a   :  { %2523 = vperm.xlu1 %3524, %v4285_v13  }
 0xc9b   :  { %3451 = vmatpush3.bf16.msra.mxu0 %v3450_v7 }
 0xc9c   :  { %3453 = vmatprep.subr.bf16.mxu0 %v3452_v55 }
 0xc9e   :  { %2519 = vperm.xlu1 %3524, %v4282_v29  }
 0xc9f   :  { %3455 = vmatpush3.bf16.msra.mxu0 %v3454_v35 }
 0xca0   :  { %3457 = vmatprep.subr.bf16.mxu0 %v3456_v36 }
 0xca2   :  { %3525 = vset.pattern.permute.xlu1 %v3642_v21 }
 0xca3   :  { %2511 = vperm.xlu1 %3525, %v4282_v29   ;;  %3459 = vmatpush3.bf16.msra.mxu0 %v3458_v28  ;;  %v2121_v29 = vld [vmem:[%s4618_s10] sm:$0x3f] }
 0xca4   :  { %3461 = vmatprep.subr.bf16.mxu0 %v3460_v2  ;;  %v2126_v31 = vrot.slane %v2121_v29, %v2125_v26  ;;  %v2130_v32 = vrot.slane %v2121_v29, %v2129_v30  ;;  %v2146_v43 = vrot.slane %v2121_v29, %v2145_v37  ;;  %v2134_v7 = vrot.slane %v2121_v29, %v2133_v48  ;;  %v2617_v48 = vld [vmem:[%s4619_s11 + $0x298] sm:$0xff] }
 0xca5   :  { %v2142_v19 = vrot.slane %v2121_v29, %v2141_v0  ;;  %v2618_v0 = vld [vmem:[%s4619_s11 + $0x2a0] sm:$0xff] }
 0xca6   :  { %v4390_v33 = vadd.f32 %v4078_v53, %v2126_v31  ;;  %v4393_v39 = vadd.f32 %v4080_v54, %v2130_v32  ;;  %v4398_v34 = vadd.f32 %v4087_v58, %v2130_v32  ;;  %v4405_v44 = vadd.f32 %v4085_v56, %v2126_v31 }
 0xca7   :  { %2515 = vperm.xlu1 %3525, %v4285_v13   ;;  %3463 = vmatpush3.bf16.msra.mxu0 %v3462_v14  ;;  %v2137_v54 = vsub.s32 3, %v3836_v27  ;;  %v4410_v11 = vadd.f32 %v4091_v63, %v2146_v43  ;;  %v4429_v36 = vadd.f32 %v4093_v3, %v2134_v7  ;;  %v4438_v28 = vadd.f32 %v4101_v10, %v2134_v7 }
 0xca8   :  { %3465 = vmatprep.subr.bf16.mxu0 %v3464_v22  ;;  %v2396_v13 = vmul.f32 0.044715, %v4390_v33  ;;  %v2397_v8 = vmul.f32 0.044715, %v4393_v39  ;;  %v2403_v42 = vmul.f32 0.044715, %v4398_v34  ;;  %v4449_v24 = vadd.f32 %v4089_v61, %v2142_v19 }
 0xca9   :  { %v2402_v46 = vmul.f32 0.044715, %v4405_v44  ;;  %v2138_v47 = vrot.slane %v2121_v29, %v2137_v54  ;;  %v2401_v56 = vmul.f32 0.044715, %v4410_v11  ;;  %v2398_v3 = vmul.f32 0.044715, %v4429_v36 }
 0xcaa   :  { %v2408_v38 = vmul.f32 %v2396_v13, %v4390_v33  ;;  %v2409_v53 = vmul.f32 %v2397_v8, %v4393_v39  ;;  %v2415_v5 = vmul.f32 %v2403_v42, %v4398_v34  ;;  %v2404_v20 = vmul.f32 0.044715, %v4438_v28 }
 0xcab   :  { %3467 = vmatpush3.bf16.msra.mxu0 %v3466_v25  ;;  %v2414_v63 = vmul.f32 %v2402_v46, %v4405_v44  ;;  %v4422_v1 = vadd.f32 %v4097_v6, %v2138_v47  ;;  %v2413_v15 = vmul.f32 %v2401_v56, %v4410_v11  ;;  %v4432_v40 = vadd.f32 %v4103_v12, %v2138_v47 }
 0xcac   :  { %v2420_v45 = vmul.f32 %v2408_v38, %v4390_v33  ;;  %v2421_v58 = vmul.f32 %v2409_v53, %v4393_v39  ;;  %v2427_v52 = vmul.f32 %v2415_v5, %v4398_v34  ;;  %v2410_v27 = vmul.f32 %v2398_v3, %v4429_v36 }
 0xcad   :  { %v2426_v59 = vmul.f32 %v2414_v63, %v4405_v44  ;;  %v2399_v35 = vmul.f32 0.044715, %v4422_v1  ;;  %v2425_v60 = vmul.f32 %v2413_v15, %v4410_v11  ;;  %v2405_v17 = vmul.f32 0.044715, %v4432_v40 }
 0xcae   :  { %v2432_v50 = vadd.f32 %v2420_v45, %v4390_v33  ;;  %v2433_v51 = vadd.f32 %v2421_v58, %v4393_v39  ;;  %v2439_v57 = vadd.f32 %v2427_v52, %v4398_v34  ;;  %v2416_v26 = vmul.f32 %v2404_v20, %v4438_v28  ;;  %v2598_v45 = vld [vmem:[%s4619_s11 + $0x200] sm:$0xff] }
 0xcaf   :  { %v2438_v62 = vadd.f32 %v2426_v59, %v4405_v44  ;;  %v2411_v2 = vmul.f32 %v2399_v35, %v4422_v1  ;;  %v2437_v12 = vadd.f32 %v2425_v60, %v4410_v11  ;;  %v2417_v10 = vmul.f32 %v2405_v17, %v4432_v40  ;;  %v2600_v35 = vld [vmem:[%s4619_s11 + $0x210] sm:$0xff] }
 0xcb0   :  { %v2444_v55 = vmul.f32 0.7978846, %v2432_v50  ;;  %v2445_v16 = vmul.f32 0.7978846, %v2433_v51  ;;  %v2451_v6 = vmul.f32 0.7978846, %v2439_v57  ;;  %v2422_v29 = vmul.f32 %v2410_v27, %v4429_v36 }
 0xcb1   :  { %v2450_v18 = vmul.f32 0.7978846, %v2438_v62  ;;  %v2423_v21 = vmul.f32 %v2411_v2, %v4422_v1  ;;  %v2449_v14 = vmul.f32 0.7978846, %v2437_v12  ;;  %v4455_v30 = vadd.f32 %v4099_v9, %v2146_v43  ;;  %v2619_v2 = vld [vmem:[%s4619_s11 + $0x2a8] sm:$0xff] }
 0xcb2   :  { %3579 = vtanh.f32 %v2444_v55  ;;  %v2429_v31 = vmul.f32 %v2417_v10, %v4432_v40  ;;  %v2400_v37 = vmul.f32 0.044715, %v4449_v24  ;;  %v4460_v61 = vadd.f32 %v4095_v4, %v2142_v19  ;;  %v2599_v4 = vld [vmem:[%s4619_s11 + $0x208] sm:$0xff] }
 0xcb3   :  { %3581 = vtanh.f32 %v2445_v16  ;;  %v2435_v25 = vadd.f32 %v2423_v21, %v4422_v1  ;;  %v2428_v42 = vmul.f32 %v2416_v26, %v4438_v28  ;;  %v2384_v53 = vmul.f32 0.5, %v4390_v33 }
 0xcb4   :  { %3583 = vtanh.f32 %v2451_v6  ;;  %v2385_v54 = vmul.f32 0.5, %v4393_v39  ;;  %v2434_v9 = vadd.f32 %v2422_v29, %v4429_v36  ;;  %v2407_v43 = vmul.f32 0.044715, %v4455_v30  ;;  %v2616_v39 = vld [vmem:[%s4619_s11 + $0x290] sm:$0xff]  ;;  %v2601_v6 = vld [vmem:[%s4619_s11 + $0x218] sm:$0xff] }
 0xcb5   :  { %3585 = vtanh.f32 %v2450_v18  ;;  %v2447_v38 = vmul.f32 0.7978846, %v2435_v25  ;;  %v2441_v58 = vadd.f32 %v2429_v31, %v4432_v40  ;;  %v2391_v33 = vmul.f32 0.5, %v4398_v34  ;;  %v2620_v29 = vld [vmem:[%s4619_s11 + $0x2b0] sm:$0xff] }
 0xcb6   :  { %3587 = vtanh.f32 %v2449_v14  ;;  %v2412_v50 = vmul.f32 %v2400_v37, %v4449_v24  ;;  %v2406_v56 = vmul.f32 0.044715, %v4460_v61  ;;  %v2440_v63 = vadd.f32 %v2428_v42, %v4438_v28 }
 0xcb7   :  { %3589 = vtanh.f32 %v2447_v38  ;;  %v3470_v15 = vpack.c.bf16 %v2599_v4, %v2598_v45  ;;  %v2446_v16 = vmul.f32 0.7978846, %v2434_v9  ;;  %v2419_v57 = vmul.f32 %v2407_v43, %v4455_v30  ;;  %v2604_v9 = vld [vmem:[%s4619_s11 + $0x230] sm:$0xff]  ;;  %v2605_v43 = vld [vmem:[%s4619_s11 + $0x238] sm:$0xff] }
 0xcb8   :  { %v3472_v59 = vpack.c.bf16 %v2617_v48, %v2616_v39  ;;  %v2453_v60 = vmul.f32 0.7978846, %v2441_v58  ;;  %v2424_v17 = vmul.f32 %v2412_v50, %v4449_v24  ;;  %v2418_v12 = vmul.f32 %v2406_v56, %v4460_v61  ;;  %v2623_v58 = vld [vmem:[%s4619_s11 + $0x2c8] sm:$0xff]  ;;  %v2606_v50 = vld [vmem:[%s4619_s11 + $0x240] sm:$0xff] }
 0xcb9   :  { %v3474_v21 = vpack.c.bf16 %v2601_v6, %v2600_v35  ;;  %3591 = vtanh.f32 %v2446_v16  ;;  %v2452_v27 = vmul.f32 0.7978846, %v2440_v63  ;;  %v2390_v14 = vmul.f32 0.5, %v4405_v44  ;;  %v2621_v44 = vld [vmem:[%s4619_s11 + $0x2b8] sm:$0xff]  ;;  %v2607_v56 = vld [vmem:[%s4619_s11 + $0x248] sm:$0xff] }
 0xcba   :  { %v3476_v10 = vpack.c.bf16 %v2619_v2, %v2618_v0  ;;  %3593 = vtanh.f32 %v2453_v60  ;;  %v2431_v25 = vmul.f32 %v2419_v57, %v4455_v30  ;;  %v2436_v31 = vadd.f32 %v2424_v17, %v4449_v24  ;;  %v2609_v60 = vld [vmem:[%s4619_s11 + $0x258] sm:$0xff]  ;;  %v2627_v17 = vld [vmem:[%s4619_s11 + $0x2e8] sm:$0xff] }
 0xcbb   :  { %v2389_v37 = vmul.f32 0.5, %v4410_v11  ;;  %3595 = vtanh.f32 %v2452_v27  ;;  %v2430_v38 = vmul.f32 %v2418_v12, %v4460_v61  ;;  %v2622_v11 = vld [vmem:[%s4619_s11 + $0x2c0] sm:$0xff]  ;;  %v2387_v63 = vmul.f32 0.5, %v4422_v1  ;;  %v2608_v1 = vld [vmem:[%s4619_s11 + $0x250] sm:$0xff] }
 0xcbc   :  { %v3580_v22 = vpop.eup %3579  ;;  %v2443_v45 = vadd.f32 %v2431_v25, %v4455_v30  ;;  %v3484_v48 = vpack.c.bf16 %v2623_v58, %v2622_v11  ;;  %v3486_v16 = vpack.c.bf16 %v2607_v56, %v2606_v50  ;;  %v2386_v12 = vmul.f32 0.5, %v4429_v36 }
 0xcbd   :  { %v3582_v23 = vpop.eup %3581  ;;  %v2468_v32 = vadd.f32 1.0, %v3580_v22  ;;  %v2602_v22 = vld [vmem:[%s4619_s11 + $0x220] sm:$0xff] }
 0xcbe   :  { %v2469_v13 = vadd.f32 1.0, %v3582_v23  ;;  %v3584_v8 = vpop.eup %3583  ;;  %v2603_v23 = vld [vmem:[%s4619_s11 + $0x228] sm:$0xff] }
 0xcbf   :  { %v2480_v5 = vmul.f32 %v2468_v32, %v2384_v53  ;;  %v2475_v47 = vadd.f32 1.0, %v3584_v8  ;;  %v3586_v7 = vpop.eup %3585  ;;  %v3478_v8 = vpack.c.bf16 %v2603_v23, %v2602_v22  ;;  %v2629_v23 = vld [vmem:[%s4619_s11 + $0x2f8] sm:$0xff] }
 0xcc0   :  { %v2481_v46 = vmul.f32 %v2469_v13, %v2385_v54  ;;  %v3588_v3 = vpop.eup %3587  ;;  %v2474_v19 = vadd.f32 1.0, %v3586_v7  ;;  %v3480_v54 = vpack.c.bf16 %v2621_v44, %v2620_v29  ;;  %v2624_v7 = vld [vmem:[%s4619_s11 + $0x2d0] sm:$0xff] }
 0xcc1   :  { %v2487_v62 = vmul.f32 %v2475_v47, %v2391_v33  ;;  %v2473_v26 = vadd.f32 1.0, %v3588_v3  ;;  %v3590_v42 = vpop.eup %3589  ;;  %v2442_v47 = vadd.f32 %v2430_v38, %v4460_v61  ;;  %v2626_v3 = vld [vmem:[%s4619_s11 + $0x2e0] sm:$0xff] }
 0xcc2   :  { %v2486_v32 = vmul.f32 %v2474_v19, %v2390_v14  ;;  %v2471_v33 = vadd.f32 1.0, %v3590_v42  ;;  %v3490_v19 = vpack.c.bf16 %v2609_v60, %v2608_v1  ;;  %v2610_v14 = vld [vmem:[%s4619_s11 + $0x260] sm:$0xff] }
 0xcc3   :  { %v2485_v4 = vmul.f32 %v2473_v26, %v2389_v37  ;;  %v2454_v57 = vmul.f32 0.7978846, %v2442_v47  ;;  %v2392_v26 = vmul.f32 0.5, %v4438_v28  ;;  %v3061_v60 = vld [vmem:[%s4621_s13] ss:$0 sm:$0xff] }
 0xd0b   :  { %v2495_v51 = vpop.permute.xlu0 %2494  ;;  %v2504_v52 = vpop.permute.xlu1 %2503 }
 0xd0c   :  { %v2526_v34 = vmul.f32 %v2495_v51, %v2480_v5  ;;  %v2527_v55 = vmul.f32 %v2504_v52, %v2481_v46  ;;  %v2448_v5 = vmul.f32 0.7978846, %v2436_v31  ;;  %v3482_v46 = vpack.c.bf16 %v2605_v43, %v2604_v9  ;;  %v3592_v52 = vpop.eup %3591 }
 0xd0d   :  { %v2455_v51 = vmul.f32 0.7978846, %v2443_v45  ;;  %v2470_v6 = vadd.f32 1.0, %v3592_v52  ;;  %v2388_v45 = vmul.f32 0.5, %v4449_v24 }
 0xd0e   :  { %2778 = vmatprep.mubr.f32.mxu1 %v2527_v55  ;;  %v3594_v55 = vpop.eup %3593  ;;  %3597 = vtanh.f32 %v2448_v5 }
 0xd0f   :  { %2779 = vmatmul.mubr.f32.vlgmr.msra.gmra.mrb[24].mxu1 %v2526_v34  ;;  %v2508_v18 = vpop.permute.xlu1 %2507  ;;  %v2625_v34 = vld [vmem:[%s4619_s11 + $0x2d8] sm:$0xff]  ;;  %3599 = vtanh.f32 %v2455_v51  ;;  %v2477_v0 = vadd.f32 1.0, %v3594_v55 }
 0xd10   :  { %3471 = vmatpush3.bf16.msra.mxu1 %v3470_v15  ;;  %v2531_v20 = vmul.f32 %v2508_v18, %v2487_v62  ;;  %v2483_v15 = vmul.f32 %v2471_v33, %v2387_v63  ;;  %v3488_v35 = vpack.c.bf16 %v2625_v34, %v2624_v7  ;;  %v3596_v62 = vpop.eup %3595  ;;  %v2393_v18 = vmul.f32 0.5, %v4432_v40  ;;  %v2628_v40 = vld [vmem:[%s4619_s11 + $0x2f0] sm:$0xff] }
 0xd11   :  { %3473 = vmatprep.subr.bf16.mxu1 %v3472_v59  ;;  %3601 = vtanh.f32 %v2454_v57  ;;  %v2476_v27 = vadd.f32 1.0, %v3596_v62 }
 0xd12   :  { %2783 = vmatprep.mubr.f32.mxu1 %v2531_v20  ;;  %v2482_v20 = vmul.f32 %v2470_v6, %v2386_v12  ;;  %v2489_v22 = vmul.f32 %v2477_v0, %v2393_v18 }
 0xd13   :  { %v2488_v31 = vmul.f32 %v2476_v27, %v2392_v26 }
 0xd14   :  { %3475 = vmatpush3.bf16.msra.mxu1 %v3474_v21  ;;  %v2500_v13 = vpop.permute.xlu1 %2499  ;;  %v3492_v21 = vpack.c.bf16 %v2627_v17, %v2626_v3 }
 0xd15   :  { %v2530_v53 = vmul.f32 %v2500_v13, %v2486_v32  ;;  %3477 = vmatprep.subr.bf16.mxu1 %v3476_v10  ;;  %v2611_v10 = vld [vmem:[%s4619_s11 + $0x268] sm:$0xff]  ;;  %v3496_v32 = vpack.c.bf16 %v2629_v23, %v2628_v40  ;;  %v2612_v13 = vld [vmem:[%s4619_s11 + $0x270] sm:$0xff] }
 0xd16   :  { %v3494_v44 = vpack.c.bf16 %v2611_v10, %v2610_v14 }
 0xd17   :  { %2784 = vmatmul.mubr.f32.gmra.mrb[26].mxu1 %v2530_v53 }
 0xd18   :  { %3479 = vmatpush3.bf16.msra.mxu1 %v3478_v8  ;;  %2928 = vmatprep.mubr.f32.mxu1 %v2485_v4  ;;  %v2613_v8 = vld [vmem:[%s4619_s11 + $0x278] sm:$0xff]  ;;  %v3598_v37 = vpop.eup %3597  ;;  %v2395_v4 = vmul.f32 0.5, %v4455_v30 }
 0xd19   :  { %v2524_v39 = vpop.permute.xlu1 %2523  ;;  %3481 = vmatprep.subr.bf16.mxu1 %v3480_v54  ;;  %v3600_v42 = vpop.eup %3599  ;;  %v3498_v53 = vpack.c.bf16 %v2613_v8, %v2612_v13  ;;  %v2472_v54 = vadd.f32 1.0, %v3598_v37 }
 0xd1a   :  { %v2533_v29 = vmul.f32 %v2524_v39, %v2489_v22  ;;  %v2479_v43 = vadd.f32 1.0, %v3600_v42 }
 0xd1b   :  { %v3602_v9 = vpop.eup %3601  ;;  %v2484_v11 = vmul.f32 %v2472_v54, %v2388_v45 }
 0xd1c   :  { %3483 = vmatpush3.bf16.msra.mxu1 %v3482_v46  ;;  %v2478_v58 = vadd.f32 1.0, %v3602_v9  ;;  %v2491_v5 = vmul.f32 %v2479_v43, %v2395_v4  ;;  %v2394_v46 = vmul.f32 0.5, %v4460_v61 }
 0xd1d   :  { %v2520_v59 = vpop.permute.xlu1 %2519  ;;  %3485 = vmatprep.subr.bf16.mxu1 %v3484_v48 }
 0xd1e   :  { %v2529_v2 = vmul.f32 %v2520_v59, %v2483_v15  ;;  %v2490_v33 = vmul.f32 %v2478_v58, %v2394_v46 }
 0xd20   :  { %3487 = vmatpush3.bf16.msra.mxu1 %v3486_v16  ;;  %2853 = vmatprep.mubr.f32.mxu0 %v2529_v2 }
 0xd21   :  { %3489 = vmatprep.subr.bf16.mxu1 %v3488_v35 }
 0xd22   :  { %v2512_v36 = vpop.permute.xlu1 %2511 }
 0xd23   :  { %v2528_v25 = vmul.f32 %v2512_v36, %v2482_v20 }
 0xd24   :  { %3491 = vmatpush3.bf16.msra.mxu1 %v3490_v19 }
 0xd25   :  { %2854 = vmatmul.mubr.f32.vlgmr.msra.gmra.mrb[28].mxu0 %v2528_v25  ;;  %3493 = vmatprep.subr.bf16.mxu1 %v3492_v21 }
 0xd26   :  { %v2516_v38 = vpop.permute.xlu1 %2515  ;;  %2858 = vmatprep.mubr.f32.mxu0 %v2533_v29 }
 0xd27   :  { %v2532_v28 = vmul.f32 %v2516_v38, %v2488_v31  ;;  %v3062_v38 = vld [vmem:[%s4622_s14] ss:$0 sm:$0xff]  ;;  %s3607_s14 = scalar_lea.vmem %s3002_s5, 256 }
 0xd28   :  { %3495 = vmatpush3.bf16.msra.mxu1 %v3494_v44  ;;  %p3608_p0 = scmp.ne.s32.totalorder %s3002_s5, %s3607_s14  ;;  %p3613_p2 = scmp.lt.s32.totalorder %s3607_s14, %s3607_s14 }
 0xd29   :  { %2859 = vmatmul.mubr.f32.gmra.mrb[30].mxu0 %v2532_v28  ;;  %3497 = vmatprep.subr.bf16.mxu1 %v3496_v32  ;;  %v3063_v28 = vld [vmem:[%s4623_s15] ss:$0 sm:$0xff] }
 0xd2a   :  { %p3614_p3 = por %p3613_p2, %p3612_p1 }
 0xd2c   :  { %3499 = vmatpush3.bf16.msra.mxu1 %v3498_v53  ;;  %p3615_p4 = pnand %p3614_p3, %p3608_p0 }
 0xd2f   :  { %2929 = vmatmul.mubr.f32.vlgmr.msra.gmra.mrb[28].mxu1 %v2484_v11 }
 0xd30   :  { %2933 = vmatprep.mubr.f32.mxu1 %v2491_v5 }
 0xd33   :  { %2934 = vmatmul.mubr.f32.gmra.mrb[30].mxu1 %v2490_v33 }
 0xd61   :  { %v3363_v47 = vpop.f32.mrb[26].mxu0 }
 0xd62   :  { %v2705_v39 = vpop.f32.mrb[27].mxu0 }
 0xde2   :  { %v3155_v48 = vpop.f32.mrb[24].mxu1 }
 0xde3   :  { %v3156_v50 = vpop.f32.mrb[25].mxu1 }
 0xde4   :  { %v3157_v56 = vadd.f32 %v3156_v50, %v3155_v48 }
 0xde6   :  { %v2781_v51 = vadd.f32 %v3157_v56, %v2705_v39 }
 0xdea   :  { %v3158_v52 = vpop.f32.mrb[26].mxu1 }
 0xdeb   :  { %v3159_v24 = vpop.f32.mrb[27].mxu1 }
 0xdec   :  { %v3160_v63 = vadd.f32 %v3159_v24, %v3158_v52 }
 0xdee   :  { %v2786_v7 = vadd.f32 %v3363_v47, %v3160_v63 }
 0xdf8   :  { %v3193_v30 = vpop.f32.mrb[28].mxu0 }
 0xdf9   :  { %v3194_v34 = vpop.f32.mrb[29].mxu0 }
 0xdfa   :  { %v3195_v55 = vadd.f32 %v3194_v34, %v3193_v30 }
 0xdfc   :  { %v2856_v15 = vadd.f32 %v3195_v55, %v2781_v51  ;;  %v3196_v16 = vpop.f32.mrb[30].mxu0 }
 0xdfd   :  { %v3197_v57 = vpop.f32.mrb[31].mxu0 }
 0xdfe   :  { %v3198_v61 = vadd.f32 %v3197_v57, %v3196_v16 }
 0xe00   :  { %v2861_v59 = vadd.f32 %v3198_v61, %v2786_v7 }
 0xe02   :  { %v3231_v35 = vpop.f32.mrb[28].mxu1 }
 0xe03   :  { %v3232_v6 = vpop.f32.mrb[29].mxu1 }
 0xe04   :  { %v3233_v1 = vadd.f32 %v3232_v6, %v3231_v35 }
 0xe06   :  { %v2931_v62 = vadd.f32 %v3233_v1, %v2856_v15  ;;  %v3234_v0 = vpop.f32.mrb[30].mxu1 }
 0xe07   :  { %v3235_v2 = vpop.f32.mrb[31].mxu1 }
 0xe08   :  { %v3236_v3 = vadd.f32 %v3235_v2, %v3234_v0  ;;  %v2946_v17 = vadd.f32 %v3061_v60, %v2931_v62 }
 0xe0a   :  { %v2936_v12 = vadd.f32 %v3236_v3, %v2861_v59  ;;  %v2950_v18 = vsel %vm60_vm0, %v2946_v17, 0.0 }
 0xe0b   :  { %2951 = vadd.xlane.f32.xlu1 %v2950_v18 }
 0xe0c   :  { %v2947_v19 = vadd.f32 %v3061_v60, %v2936_v12 }
 0xe0e   :  { %v2953_v20 = vsel %vm60_vm0, %v2947_v19, 0.0 }
 0xe0f   :  { %2954 = vadd.xlane.f32.xlu0 %v2953_v20 }
 0xe98   :  { %v2952_v21 = vpop.xlane.xlu1 %2951 }
 0xe99   :  { %v2956_v27 = vmul.f32 0.03125, %v2952_v21 }
 0xe9b   :  { %v2958_v14 = vsub.f32 %v2946_v17, %v2956_v27 }
 0xe9c   :  { %v2955_v10 = vpop.xlane.xlu0 %2954 }
 0xe9d   :  { %v2957_v22 = vmul.f32 0.03125, %v2955_v10  ;;  %v2960_v36 = vmul.f32 %v2958_v14, %v2958_v14 }
 0xe9f   :  { %v2959_v40 = vsub.f32 %v2947_v19, %v2957_v22  ;;  %v2962_v23 = vsel %vm60_vm0, %v2960_v36, 0.0 }
 0xea0   :  { %2963 = vadd.xlane.f32.xlu1 %v2962_v23 }
 0xea1   :  { %v2961_v25 = vmul.f32 %v2959_v40, %v2959_v40 }
 0xea3   :  { %v2965_v26 = vsel %vm60_vm0, %v2961_v25, 0.0 }
 0xea4   :  { %2966 = vadd.xlane.f32.xlu0 %v2965_v26 }
 0xf2d   :  { %v2964_v29 = vpop.xlane.xlu1 %2963 }
 0xf2e   :  { %v2968_v44 = vmul.f32 0.03125, %v2964_v29 }
 0xf30   :  { %v2970_v31 = vadd.f32 1e-05, %v2968_v44 }
 0xf31   :  { %v2967_v32 = vpop.xlane.xlu0 %2966 }
 0xf32   :  { %3603 = vrsqrt.f32 %v2970_v31  ;;  %v2969_v13 = vmul.f32 0.03125, %v2967_v32 }
 0xf34   :  { %v2971_v8 = vadd.f32 1e-05, %v2969_v13 }
 0xf36   :  { %3605 = vrsqrt.f32 %v2971_v8 }
 0xf3c   :  { %v3604_v37 = vpop.eup %3603 }
 0xf3d   :  { %v2974_v42 = vmul.f32 %v3604_v37, %v2958_v14 }
 0xf3f   :  { %v2982_v53 = vmul.f32 %v3062_v38, %v2974_v42 }
 0xf40   :  { %v3606_v54 = vpop.eup %3605 }
 0xf41   :  { %v2975_v9 = vmul.f32 %v3606_v54, %v2959_v40  ;;  %v2990_v43 = vadd.f32 %v3063_v28, %v2982_v53 }
 0xf43   :  { %v2983_v45 = vmul.f32 %v3062_v38, %v2975_v9  ;;  %v2992_v4 = vadd.f32 %v2990_v43, %v4031_v41 }
 0xf45   :  { %v2991_v11 = vadd.f32 %v3063_v28, %v2983_v45  ;;  %2994 = vst.msk [vmem:[#allocation2] sm:$0xff] %vm60_vm0, %v2992_v4 }
 0xf47   :  { %v2993_v58 = vadd.f32 %v2991_v11, %v4054_v49 }
 0xf49   :  { %2995 = vst.msk [vmem:[#allocation2 + $0x8] sm:$0xff] %vm60_vm0, %v2993_v58 }
 0xf4a   :  { %3618 = shalt.err (!%p3615_p4)
}
 0xf4b   :  { %s3619_s1 = scalar_lea.hbm %s4624_s16, 256 }
 0xf4c   :  { %p3620_p5 = scmp.ne.s32.totalorder %s4624_s16, %s3619_s1  ;;  %p3623_p6 = scmp.lt.u32.totalorder %s3619_s1, %s4624_s16 }
 0xf4e   :  { %p3625_p7 = pnand %p3623_p6, %p3620_p5 }
 0xf50   :  { %3628 = shalt.err (!%p3625_p7)
}
 0xf51   :  { %s3644_s24 = smov 128   ;;  %s3645_s25 = smov 8  }
 0xf52   :  { %3007 = dma.vmem_to_hbm [thread:$0]  %s3002_s5, 256, %s4624_s16, [#allocation3], %s3644_s24, %s3644_s24, %s3645_s25  }
 0xf53   :  { %3629 = dma.done.wait [#allocation3], 256  }
 0xf54   :  { %3630 = vsyncadd [#allocation3], 4294967040 }
 0xf55   :  { %3011 = vsyncpa [#allocation3], 1 }

</bundles_post_ra>
